<compile_context>
chip_gen: v7x
topology: tpu7x:2x2x1
jax: 0.10.0
libtpu: 0.0.40
codegen_flags: <defaults>
</compile_context>

<pallas_src>
import functools

import jax
import jax.numpy as jnp
from jax.experimental import pallas as pl
from jax.experimental.pallas import tpu as pltpu


# ---------------------------------------------------------------------------
# Kernel: 4 fused (Linear -> ReLU) stages; all weights/biases VMEM-resident,
# so we only tile over the batch dimension.  MXU operands are bf16, accumulation
# is f32; the bias/ReLU epilogue is bf16 on v6e/v7x, f32 on v5e.
# ---------------------------------------------------------------------------
def relation_mlp_kernel(
    x_ref,
    w1_ref, b1_ref,
    w2_ref, b2_ref,
    w3_ref, b3_ref,
    w4_ref, b4_ref,
    o_ref,
    *,
    bf16_epilogue,
):
    def layer(h_bf16, w_ref, b_ref, last):
        acc = jnp.dot(h_bf16, w_ref[...], preferred_element_type=jnp.float32)
        if bf16_epilogue:
            # bf16 VALU path (v6e/v7x): bias add + ReLU in bf16, feeds next dot directly.
            return jnp.maximum(acc.astype(jnp.bfloat16) + b_ref[...], 0)
        # f32 VPU path (v5e-safe): bias add + ReLU in f32, cast only before next dot.
        h = jnp.maximum(acc + b_ref[...], 0.0)
        return h if last else h.astype(jnp.bfloat16)

    h = x_ref[...].astype(jnp.bfloat16)                      # (tm, 512) bf16
    h = layer(h, w1_ref, b1_ref, last=False)
    h = layer(h, w2_ref, b2_ref, last=False)
    h = layer(h, w3_ref, b3_ref, last=False)
    h = layer(h, w4_ref, b4_ref, last=True)
    o_ref[...] = h.astype(o_ref.dtype)                       # (tm, 256)


def _round_up(n, m):
    return ((n + m - 1) // m) * m


def _default_bf16_epilogue():
    """bf16 VALU exists on v6e/v7x; v5e (and older) get the f32 epilogue."""
    try:
        kind = jax.devices()[0].device_kind.lower()
    except Exception:
        return False
    return ("v6" in kind) or ("v7" in kind)


def _const_spec(shape):
    """Grid-invariant block: fetched once; single-buffered if the API allows it."""
    idx = lambda i: (0, 0)
    try:
        return pl.BlockSpec(shape, idx, pipeline_mode=pl.Buffered(1))
    except Exception:
        return pl.BlockSpec(shape, idx)


def relation_module_forward(x, params, *, tm=512, bf16_epilogue=None):
    """x: (N, 512) float32. params: 4x (W (in,out), b (out,)). Returns (N, 256) f32."""
    (w1, b1), (w2, b2), (w3, b3), (w4, b4) = params
    N, D_in = x.shape
    assert D_in == 512
    D_out = w4.shape[1]

    if bf16_epilogue is None:
        bf16_epilogue = _default_bf16_epilogue()

    # Batch tile: multiple of 8 (f32 sublane) / 16 (bf16 epilogue packing), capped so
    # the grid keeps >=2 steps when possible (v7x has 2 TensorCores).
    mult = 16 if bf16_epilogue else 8
    tm = _round_up(max(tm, mult), mult)
    tm_eff = min(tm, _round_up(pl.cdiv(N, 2), mult))
    grid = pl.cdiv(N, tm_eff)          # ragged last block; no host-side pad/slice

    # bf16 MXU operands, f32 accumulate. Bias dtype follows the epilogue precision.
    w1b, w2b, w3b, w4b = (w.astype(jnp.bfloat16) for w in (w1, w2, w3, w4))
    b_dtype = jnp.bfloat16 if bf16_epilogue else jnp.float32
    b1r, b2r, b3r, b4r = (b.reshape(1, -1).astype(b_dtype) for b in (b1, b2, b3, b4))

    flops = 2 * N * (3 * 512 * 512 + 512 * D_out)
    bytes_accessed = (
        N * 512 * 4                                     # x (f32)
        + (3 * 512 * 512 + 512 * D_out) * 2             # weights (bf16)
        + (3 * 512 + D_out) * jnp.dtype(b_dtype).itemsize
        + N * D_out * 4                                 # output (f32)
    )

    kernel = functools.partial(relation_mlp_kernel, bf16_epilogue=bf16_epilogue)

    out = pl.pallas_call(
        kernel,
        out_shape=jax.ShapeDtypeStruct((N, D_out), x.dtype),
        grid_spec=pltpu.PrefetchScalarGridSpec(
            num_scalar_prefetch=0,
            grid=(grid,),
            in_specs=[
                pl.BlockSpec((tm_eff, 512), lambda i: (i, 0)),   # x tile
                _const_spec(w1b.shape), _const_spec(b1r.shape),
                _const_spec(w2b.shape), _const_spec(b2r.shape),
                _const_spec(w3b.shape), _const_spec(b3r.shape),
                _const_spec(w4b.shape), _const_spec(b4r.shape),
            ],
            out_specs=pl.BlockSpec((tm_eff, D_out), lambda i: (i, 0)),
        ),
        compiler_params=pltpu.CompilerParams(
            dimension_semantics=("parallel",),
        ),
        cost_estimate=pl.CostEstimate(
            flops=flops, transcendentals=0, bytes_accessed=bytes_accessed),
    )(x, w1b, b1r, w2b, b2r, w3b, b3r, w4b, b4r)

    return out


# ---------------------------------------------------------------------------
# Deterministic parameter init (PyTorch nn.Linear default: U(-1/sqrt(in), +1/sqrt(in))).
# Weights are stored transposed relative to PyTorch, i.e. (in_features, out_features).
# ---------------------------------------------------------------------------
def init_params(key):
    dims = [(512, 512), (512, 512), (512, 512), (512, 256)]
    params = []
    for d_in, d_out in dims:
        key, kw, kb = jax.random.split(key, 3)
        bound = 1.0 / jnp.sqrt(jnp.float32(d_in))
        w = jax.random.uniform(kw, (d_in, d_out), jnp.float32, -bound, bound)
        b = jax.random.uniform(kb, (d_out,), jnp.float32, -bound, bound)
        params.append((w, b))
    return params


def reference_forward_mixed(x, params, *, bf16_epilogue):
    """Same mixed precision as the kernel (bf16 MXU operands, f32 accumulate)."""
    h = x.astype(jnp.bfloat16)
    n = len(params)
    for idx, (w, b) in enumerate(params):
        acc = jnp.dot(h, w.astype(jnp.bfloat16), preferred_element_type=jnp.float32)
        if bf16_epilogue:
            h = jnp.maximum(acc.astype(jnp.bfloat16) + b.astype(jnp.bfloat16), 0)
        else:
            hf = jnp.maximum(acc + b, 0.0)
            h = hf if idx == n - 1 else hf.astype(jnp.bfloat16)
    return h.astype(jnp.float32)


def reference_forward_f32(x, params):
    h = x
    for w, b in params:
        h = jnp.maximum(h @ w + b, 0.0)
    return h


if __name__ == "__main__":
    key = jax.random.PRNGKey(0)
    key, kx1, kx2 = jax.random.split(key, 3)
    params = init_params(key)

    bf16_ep = _default_bf16_epilogue()

    # Case 1: small batch of relation-pair embeddings (N, 256*2) = (16, 512).
    x_small = jax.random.normal(kx1, (16, 512), jnp.float32)
    out_small = jax.block_until_ready(
        relation_module_forward(x_small, params, bf16_epilogue=bf16_ep))
    assert out_small.shape == (16, 256), out_small.shape
    ref_small = reference_forward_mixed(x_small, params, bf16_epilogue=bf16_ep)
    assert jnp.allclose(out_small, ref_small, atol=2e-2, rtol=2e-2), "mismatch (small)"
    # Loose sanity check against the pure-f32 reference (bf16 MXU operands/epilogue).
    ref_f32 = reference_forward_f32(x_small, params)
    assert jnp.allclose(out_small, ref_f32, atol=1e-1, rtol=1e-1), "mismatch vs f32 ref"

    # Case 2: larger ragged batch exercising the capped tile (tm_eff), a multi-step
    # (megacore-parallel) grid and the no-pad ragged last block.
    x_big = jax.random.normal(kx2, (272, 512), jnp.float32)
    out_big = jax.block_until_ready(
        relation_module_forward(x_big, params, tm=512, bf16_epilogue=bf16_ep))
    assert out_big.shape == (272, 256), out_big.shape
    ref_big = reference_forward_mixed(x_big, params, bf16_epilogue=bf16_ep)
    assert jnp.allclose(out_big, ref_big, atol=2e-2, rtol=2e-2), "mismatch (big)"

    print("KERNEL_OK")
</pallas_src>

<mosaic_0001>
module attributes {stable_mosaic.version = 11 : i64} {
  func.func @relation_mlp_kernel(%arg0: i32, %arg1: memref<8x512xf32, #tpu.memory_space<vmem>>, %arg2: memref<512x512xbf16, #tpu.memory_space<vmem>>, %arg3: memref<1x512xf32, #tpu.memory_space<vmem>>, %arg4: memref<512x512xbf16, #tpu.memory_space<vmem>>, %arg5: memref<1x512xf32, #tpu.memory_space<vmem>>, %arg6: memref<512x512xbf16, #tpu.memory_space<vmem>>, %arg7: memref<1x512xf32, #tpu.memory_space<vmem>>, %arg8: memref<512x256xbf16, #tpu.memory_space<vmem>>, %arg9: memref<1x256xf32, #tpu.memory_space<vmem>>, %arg10: memref<8x256xf32, #tpu.memory_space<vmem>>) attributes {dimension_semantics = [#tpu.dimension_semantics<parallel>], iteration_bounds = array<i64: 2>, scalar_prefetch = 0 : i64, scratch_operands = 0 : i64, tpu.core_type = #tpu.core_type<tc>, window_params = [{transform_indices = @transform_0, window_bounds = array<i64: 8, 512>}, {pipeline_mode = #tpu.pipeline_mode<synchronous>, transform_indices = @transform_1, window_bounds = array<i64: 512, 512>}, {pipeline_mode = #tpu.pipeline_mode<synchronous>, transform_indices = @transform_2, window_bounds = array<i64: 1, 512>}, {pipeline_mode = #tpu.pipeline_mode<synchronous>, transform_indices = @transform_3, window_bounds = array<i64: 512, 512>}, {pipeline_mode = #tpu.pipeline_mode<synchronous>, transform_indices = @transform_4, window_bounds = array<i64: 1, 512>}, {pipeline_mode = #tpu.pipeline_mode<synchronous>, transform_indices = @transform_5, window_bounds = array<i64: 512, 512>}, {pipeline_mode = #tpu.pipeline_mode<synchronous>, transform_indices = @transform_6, window_bounds = array<i64: 1, 512>}, {pipeline_mode = #tpu.pipeline_mode<synchronous>, transform_indices = @transform_7, window_bounds = array<i64: 512, 256>}, {pipeline_mode = #tpu.pipeline_mode<synchronous>, transform_indices = @transform_8, window_bounds = array<i64: 1, 256>}, {transform_indices = @transform_9, window_bounds = array<i64: 8, 256>}]} {
    %c0 = arith.constant 0 : index
    %c0_0 = arith.constant 0 : index
    %0 = vector.load %arg1[%c0, %c0_0] : memref<8x512xf32, #tpu.memory_space<vmem>>, vector<8x512xf32>
    %1 = arith.truncf %0 : vector<8x512xf32> to vector<8x512xbf16>
    %c0_1 = arith.constant 0 : index
    %c0_2 = arith.constant 0 : index
    %2 = vector.load %arg2[%c0_1, %c0_2] : memref<512x512xbf16, #tpu.memory_space<vmem>>, vector<512x512xbf16>
    %cst = arith.constant dense<0.000000e+00> : vector<8x512xf32>
    %3 = tpu.matmul %1, %2, %cst {dimension_numbers = #tpu.dot_dimension_numbers<[1], [0], [0], [1], [0, 0, 1, 1], [], []>} : vector<8x512xbf16>, vector<512x512xbf16>, vector<8x512xf32> -> vector<8x512xf32>
    %c0_3 = arith.constant 0 : index
    %c0_4 = arith.constant 0 : index
    %4 = vector.load %arg3[%c0_3, %c0_4] : memref<1x512xf32, #tpu.memory_space<vmem>>, vector<1x512xf32>
    %5 = vector.broadcast %4 : vector<1x512xf32> to vector<8x512xf32>
    %6 = arith.addf %3, %5 : vector<8x512xf32>
    %cst_5 = arith.constant 0.000000e+00 : f32
    %7 = vector.broadcast %cst_5 : f32 to vector<8x512xf32>
    %8 = arith.maximumf %6, %7 : vector<8x512xf32>
    %9 = arith.truncf %8 : vector<8x512xf32> to vector<8x512xbf16>
    %c0_6 = arith.constant 0 : index
    %c0_7 = arith.constant 0 : index
    %10 = vector.load %arg4[%c0_6, %c0_7] : memref<512x512xbf16, #tpu.memory_space<vmem>>, vector<512x512xbf16>
    %cst_8 = arith.constant dense<0.000000e+00> : vector<8x512xf32>
    %11 = tpu.matmul %9, %10, %cst_8 {dimension_numbers = #tpu.dot_dimension_numbers<[1], [0], [0], [1], [0, 0, 1, 1], [], []>} : vector<8x512xbf16>, vector<512x512xbf16>, vector<8x512xf32> -> vector<8x512xf32>
    %c0_9 = arith.constant 0 : index
    %c0_10 = arith.constant 0 : index
    %12 = vector.load %arg5[%c0_9, %c0_10] : memref<1x512xf32, #tpu.memory_space<vmem>>, vector<1x512xf32>
    %13 = vector.broadcast %12 : vector<1x512xf32> to vector<8x512xf32>
    %14 = arith.addf %11, %13 : vector<8x512xf32>
    %cst_11 = arith.constant 0.000000e+00 : f32
    %15 = vector.broadcast %cst_11 : f32 to vector<8x512xf32>
    %16 = arith.maximumf %14, %15 : vector<8x512xf32>
    %17 = arith.truncf %16 : vector<8x512xf32> to vector<8x512xbf16>
    %c0_12 = arith.constant 0 : index
    %c0_13 = arith.constant 0 : index
    %18 = vector.load %arg6[%c0_12, %c0_13] : memref<512x512xbf16, #tpu.memory_space<vmem>>, vector<512x512xbf16>
    %cst_14 = arith.constant dense<0.000000e+00> : vector<8x512xf32>
    %19 = tpu.matmul %17, %18, %cst_14 {dimension_numbers = #tpu.dot_dimension_numbers<[1], [0], [0], [1], [0, 0, 1, 1], [], []>} : vector<8x512xbf16>, vector<512x512xbf16>, vector<8x512xf32> -> vector<8x512xf32>
    %c0_15 = arith.constant 0 : index
    %c0_16 = arith.constant 0 : index
    %20 = vector.load %arg7[%c0_15, %c0_16] : memref<1x512xf32, #tpu.memory_space<vmem>>, vector<1x512xf32>
    %21 = vector.broadcast %20 : vector<1x512xf32> to vector<8x512xf32>
    %22 = arith.addf %19, %21 : vector<8x512xf32>
    %cst_17 = arith.constant 0.000000e+00 : f32
    %23 = vector.broadcast %cst_17 : f32 to vector<8x512xf32>
    %24 = arith.maximumf %22, %23 : vector<8x512xf32>
    %25 = arith.truncf %24 : vector<8x512xf32> to vector<8x512xbf16>
    %c0_18 = arith.constant 0 : index
    %c0_19 = arith.constant 0 : index
    %26 = vector.load %arg8[%c0_18, %c0_19] : memref<512x256xbf16, #tpu.memory_space<vmem>>, vector<512x256xbf16>
    %cst_20 = arith.constant dense<0.000000e+00> : vector<8x256xf32>
    %27 = tpu.matmul %25, %26, %cst_20 {dimension_numbers = #tpu.dot_dimension_numbers<[1], [0], [0], [1], [0, 0, 1, 1], [], []>} : vector<8x512xbf16>, vector<512x256xbf16>, vector<8x256xf32> -> vector<8x256xf32>
    %c0_21 = arith.constant 0 : index
    %c0_22 = arith.constant 0 : index
    %28 = vector.load %arg9[%c0_21, %c0_22] : memref<1x256xf32, #tpu.memory_space<vmem>>, vector<1x256xf32>
    %29 = vector.broadcast %28 : vector<1x256xf32> to vector<8x256xf32>
    %30 = arith.addf %27, %29 : vector<8x256xf32>
    %cst_23 = arith.constant 0.000000e+00 : f32
    %31 = vector.broadcast %cst_23 : f32 to vector<8x256xf32>
    %32 = arith.maximumf %30, %31 : vector<8x256xf32>
    %c0_24 = arith.constant 0 : index
    %c0_25 = arith.constant 0 : index
    %33 = vector.load %arg10[%c0_24, %c0_25] : memref<8x256xf32, #tpu.memory_space<vmem>>, vector<8x256xf32>
    tpu.vector_store %arg10[%c0_24, %c0_25], %32 {strides = array<i32>} : memref<8x256xf32, #tpu.memory_space<vmem>>, vector<8x256xf32>,
    return
  }
  func.func @transform_0(%arg0: i32) -> (i32, i32) {
    %c0_i32 = arith.constant 0 : i32
    %c0_i32_0 = arith.constant 0 : i32
    return %arg0, %c0_i32 : i32, i32
  }
  func.func @transform_1(%arg0: i32) -> (i32, i32) {
    %c0_i32 = arith.constant 0 : i32
    %c0_i32_0 = arith.constant 0 : i32
    %c0_i32_1 = arith.constant 0 : i32
    return %c0_i32, %c0_i32_0 : i32, i32
  }
  func.func @transform_2(%arg0: i32) -> (i32, i32) {
    %c0_i32 = arith.constant 0 : i32
    %c0_i32_0 = arith.constant 0 : i32
    %c0_i32_1 = arith.constant 0 : i32
    return %c0_i32, %c0_i32_0 : i32, i32
  }
  func.func @transform_3(%arg0: i32) -> (i32, i32) {
    %c0_i32 = arith.constant 0 : i32
    %c0_i32_0 = arith.constant 0 : i32
    %c0_i32_1 = arith.constant 0 : i32
    return %c0_i32, %c0_i32_0 : i32, i32
  }
  func.func @transform_4(%arg0: i32) -> (i32, i32) {
    %c0_i32 = arith.constant 0 : i32
    %c0_i32_0 = arith.constant 0 : i32
    %c0_i32_1 = arith.constant 0 : i32
    return %c0_i32, %c0_i32_0 : i32, i32
  }
  func.func @transform_5(%arg0: i32) -> (i32, i32) {
    %c0_i32 = arith.constant 0 : i32
    %c0_i32_0 = arith.constant 0 : i32
    %c0_i32_1 = arith.constant 0 : i32
    return %c0_i32, %c0_i32_0 : i32, i32
  }
  func.func @transform_6(%arg0: i32) -> (i32, i32) {
    %c0_i32 = arith.constant 0 : i32
    %c0_i32_0 = arith.constant 0 : i32
    %c0_i32_1 = arith.constant 0 : i32
    return %c0_i32, %c0_i32_0 : i32, i32
  }
  func.func @transform_7(%arg0: i32) -> (i32, i32) {
    %c0_i32 = arith.constant 0 : i32
    %c0_i32_0 = arith.constant 0 : i32
    %c0_i32_1 = arith.constant 0 : i32
    return %c0_i32, %c0_i32_0 : i32, i32
  }
  func.func @transform_8(%arg0: i32) -> (i32, i32) {
    %c0_i32 = arith.constant 0 : i32
    %c0_i32_0 = arith.constant 0 : i32
    %c0_i32_1 = arith.constant 0 : i32
    return %c0_i32, %c0_i32_0 : i32, i32
  }
  func.func @transform_9(%arg0: i32) -> (i32, i32) {
    %c0_i32 = arith.constant 0 : i32
    %c0_i32_0 = arith.constant 0 : i32
    return %arg0, %c0_i32 : i32, i32
  }
}

</mosaic_0001>

<bundles_post_ra>
// kernel: tpu_custom_call.1
= control target key start
LH: loop header
LB: loop body
LE: loop exit
PB: predicated region body
PF: predicated region fallthrough
CT: control target
= control target key end

     0   :  { %s5831_s0 = inlined_call_operand.hbm [shape: f32[16,512], index: 0, kind: input, shape index: {}]   ;;  %s5832_s1 = inlined_call_operand.hbm [shape: bf16[512,512], index: 1, kind: input, shape index: {}]   ;;  %s5833_s2 = inlined_call_operand.vmem [shape: f32[1,512], index: 2, kind: input, shape index: {}]   ;;  %s5834_s3 = inlined_call_operand.hbm [shape: bf16[512,512], index: 3, kind: input, shape index: {}]   ;;  %s5835_s4 = inlined_call_operand.vmem [shape: f32[1,512], index: 4, kind: input, shape index: {}]   ;;  %s5836_s5 = inlined_call_operand.hbm [shape: bf16[512,512], index: 5, kind: input, shape index: {}]   ;;  %s5837_s6 = inlined_call_operand.vmem [shape: f32[1,512], index: 6, kind: input, shape index: {}]   ;;  %s5838_s7 = inlined_call_operand.hbm [shape: bf16[512,256], index: 7, kind: input, shape index: {}]   ;;  %s5839_s8 = inlined_call_operand.vmem [shape: f32[1,256], index: 8, kind: input, shape index: {}]   ;;  %s5840_s9 = inlined_call_operand.hbm [shape: f32[16,256], index: 9, kind: output, shape index: {}]  }
   0x1   :  { %5845 = sst [smem:[#allocation16_spill]] %s5832_s1 }
   0x2   :  { %5846 = sst [smem:[#allocation17_spill]] %s5840_s9 }
   0x3   :  { %14 = vsyncpa [#allocation3], 0 }
   0x4   :  { %16 = vsyncpa [#allocation3 + $0x1], 0 }
   0x5   :  { %17 = vsyncpa [#allocation6], 0 }
   0x6   :  { %18 = vsyncpa [#allocation9], 0 }
   0x7   :  { %19 = vsyncpa [#allocation4], 0 }
   0x8   :  { %21 = vsyncpa [#allocation4 + $0x1], 0  ;;  %s5459_s30 = smov 0   ;;  %s5461_s10 = smov 0  }
   0x9   :  { %s5463_s11 = smov 0   ;;  %s5465_s12 = smov 0  }
   0xa LB: > { %s5399_s13 = smov [#allocation5]   ;;  %s5480_s15 = sadd.s32 4294967295, %s5397_s12   ;;  %s5397_s12 = sphi %s5465_s12, %s5869_s12   ;;  %s5393_s11 = sphi %s5463_s11, %s5868_s11   ;;  %s5389_s10 = sphi %s5461_s10, %s5867_s10   ;;  %s5385_s30 = sphi %s5459_s30, %s5866_s30  }
   0xb   : > { %s264_s14 = sshll.u32 %s5399_s13, 4  ;;  %p3907_p0 = scmp.ge.s32.totalorder %s5397_s12, 1  ;;  %s5485_s14 = int_to_ptr.vmem [resolvable:$true] %s264_s14 }
   0xc   : > { %p5842_p1 = scmp.eq.s32.totalorder %s5480_s15, 0  ;;  %p252_p2 = scmp.lt.s32.totalorder %s5397_s12, 3 }
   0xd   : > { %s5400_s17 = smov [#allocation8]   ;;  %s5401_s20 = smov [#allocation7]  }
   0xe   : > { %p5487_p3 = pnand %p3907_p0, %p252_p2  ;;  %s296_s18 = sshll.u32 %s5400_s17, 4  ;;  %s5500_s18 = int_to_ptr.vmem [resolvable:$true] %s296_s18 }
   0xf   : > { %s280_s21 = sshll.u32 %s5401_s20, 4  ;;  %s5849_s1 = sld [smem:[#allocation16_spill]]  ;;  %s5502_s21 = int_to_ptr.vmem [resolvable:$true] %s280_s21 }
  0x10   : > { %s5847_s16 = scalar_select %p5487_p3, 1, 0 }
  0x11   : > { %p4438_p5 = pneg %p5487_p3 }
  0x13   : > { %p5496_p6 = pnand %p4438_p5, %p5842_p1 }
  0x15   : > { %s5181_s24 = scalar_lea.hbm %s5849_s1, 16384  ;;  %p5512_p8 = pneg %p5496_p6 }
  0x16   : > { %p5182_p7 = scmp.ne.s32.totalorder %s5849_s1, %s5181_s24  ;;  %p5188_p11 = scmp.lt.u32.totalorder %s5181_s24, %s5849_s1 }
  0x18   : > { %p5184_p9 = pnand %p5512_p8, %p5182_p7 }
  0x1a   : > { %p5185_p10 = pneg %p5184_p9 }
  0x1c   : > { %p5190_p12 = pnand %p5188_p11, %p5185_p10 }
  0x1e   : > { %5193 = shalt.err (!%p5190_p12)
}
  0x1f   : > { %s5194_s13 = scalar_lea.vmem %s5485_s14, 16384  ;;  %p5202_p5 = scmp.lt.s32.totalorder %s5485_s14, %s5485_s14 }
  0x20   : > { %p5195_p13 = scmp.ne.s32.totalorder %s5485_s14, %s5194_s13  ;;  %p5203_p4 = scmp.lt.s32.totalorder %s5194_s13, %s5194_s13 }
  0x22   : > { %p5197_p0 = pnand %p5195_p13, %p5512_p8  ;;  %p5204_p7 = por %p5203_p4, %p5202_p5 }
  0x24   : > { %p5198_p2 = pneg %p5197_p0 }
  0x26   : > { %p5205_p9 = pnand %p5204_p7, %p5198_p2 }
  0x28   : > { %5208 = shalt.err (!%p5205_p9)
}
  0x29   : > { %s5402_s17 = smov 256   ;;  %s5403_s20 = smov 16  }
  0x2a   : > { %4441 = dma.hbm_to_vmem [thread:$0]  (!%p5496_p6), %s5849_s1, 16384, %s5485_s14, [#allocation6], %s5402_s17, %s5402_s17, %s5403_s20  }
  0x2b   : > { %s5209_s26 = scalar_lea.hbm %s5836_s5, 16384 }
  0x2c   : > { %p5210_p4 = scmp.ne.s32.totalorder %s5836_s5, %s5209_s26  ;;  %p5216_p12 = scmp.lt.u32.totalorder %s5209_s26, %s5836_s5 }
  0x2e   : > { %p5212_p10 = pnand %p5210_p4, %p5512_p8 }
  0x30   : > { %p5213_p11 = pneg %p5212_p10 }
  0x32   : > { %p5218_p13 = pnand %p5216_p12, %p5213_p11 }
  0x34   : > { %5221 = shalt.err (!%p5218_p13)
}
  0x35   : > { %s5222_s14 = scalar_lea.vmem %s5500_s18, 16384  ;;  %p5230_p7 = scmp.lt.s32.totalorder %s5500_s18, %s5500_s18 }
  0x36   : > { %p5223_p0 = scmp.ne.s32.totalorder %s5500_s18, %s5222_s14  ;;  %p5231_p9 = scmp.lt.s32.totalorder %s5222_s14, %s5222_s14 }
  0x38   : > { %p5225_p2 = pnand %p5223_p0, %p5512_p8  ;;  %p5232_p4 = por %p5231_p9, %p5230_p7 }
  0x3a   : > { %p5226_p5 = pneg %p5225_p2 }
  0x3c   : > { %p5233_p10 = pnand %p5232_p4, %p5226_p5 }
  0x3e   : > { %5236 = shalt.err (!%p5233_p10)
}
  0x3f   : > { %4447 = dma.hbm_to_vmem [thread:$0]  (!%p5496_p6), %s5836_s5, 16384, %s5500_s18, [#allocation9], %s5402_s17, %s5402_s17, %s5403_s20  }
  0x40   : > { %s5237_s25 = scalar_lea.hbm %s5834_s3, 16384 }
  0x41   : > { %p5238_p11 = scmp.ne.s32.totalorder %s5834_s3, %s5237_s25  ;;  %p5244_p0 = scmp.lt.u32.totalorder %s5237_s25, %s5834_s3 }
  0x43   : > { %p5240_p12 = pnand %p5238_p11, %p5512_p8 }
  0x45   : > { %p5241_p13 = pneg %p5240_p12 }
  0x47   : > { %p5246_p2 = pnand %p5244_p0, %p5241_p13 }
  0x49   : > { %5249 = shalt.err (!%p5246_p2)
}
  0x4a   : > { %s5250_s18 = scalar_lea.vmem %s5502_s21, 16384  ;;  %p5258_p4 = scmp.lt.s32.totalorder %s5502_s21, %s5502_s21 }
  0x4b   : > { %p5251_p5 = scmp.ne.s32.totalorder %s5502_s21, %s5250_s18  ;;  %p5259_p10 = scmp.lt.s32.totalorder %s5250_s18, %s5250_s18 }
  0x4d   : > { %p5253_p7 = pnand %p5251_p5, %p5512_p8  ;;  %p5260_p11 = por %p5259_p10, %p5258_p4 }
  0x4f   : > { %p5254_p9 = pneg %p5253_p7 }
  0x51   : > { %p5261_p12 = pnand %p5260_p11, %p5254_p9 }
  0x53   : > { %5264 = shalt.err (!%p5261_p12)
}
  0x54   : > { %4444 = dma.hbm_to_vmem [thread:$0]  (!%p5496_p6), %s5834_s3, 16384, %s5502_s21, [#allocation6], %s5402_s17, %s5402_s17, %s5403_s20  }
  0x55   : > { %s5404_s22 = smov [#allocation10]   ;;  %s5265_s26 = scalar_lea.hbm %s5838_s7, 8192 }
  0x56   : > { %s312_s23 = sshll.u32 %s5404_s22, 4  ;;  %p5266_p13 = scmp.ne.s32.totalorder %s5838_s7, %s5265_s26  ;;  %s313_s23 = int_to_ptr.vmem [resolvable:$true] %s312_s23 }
  0x57   : > { %p5272_p5 = scmp.lt.u32.totalorder %s5265_s26, %s5838_s7 }
  0x58   : > { %p5268_p0 = pnand %p5266_p13, %p5512_p8 }
  0x5a   : > { %p5269_p2 = pneg %p5268_p0 }
  0x5c   : > { %p5274_p7 = pnand %p5272_p5, %p5269_p2 }
  0x5e   : > { %5277 = shalt.err (!%p5274_p7)
}
  0x5f   : > { %s5278_s21 = scalar_lea.vmem %s313_s23, 8192  ;;  %p5286_p11 = scmp.lt.s32.totalorder %s313_s23, %s313_s23 }
  0x60   : > { %p5279_p9 = scmp.ne.s32.totalorder %s313_s23, %s5278_s21  ;;  %p5287_p12 = scmp.lt.s32.totalorder %s5278_s21, %s5278_s21 }
  0x62   : > { %p5281_p4 = pnand %p5279_p9, %p5512_p8  ;;  %p5288_p1 = por %p5287_p12, %p5286_p11 }
  0x64   : > { %p5282_p10 = pneg %p5281_p4 }
  0x66   : > { %p5289_p3 = pnand %p5288_p1, %p5282_p10 }
  0x68   : > { %5292 = shalt.err (!%p5289_p3)
}
  0x69   : > { %s5405_s17 = smov 128   ;;  %s5406_s27 = smov 8  }
  0x6a   : > { %4450 = dma.hbm_to_vmem [thread:$0]  (!%p5496_p6), %s5838_s7, 8192, %s313_s23, [#allocation9], %s5405_s17, %s5405_s17, %s5406_s27  }
  0x6b   : > { %s3906_s9 = sadd.s32 4294967294, %s5397_s12   ;;  %s5608_s22 = sadd.s32 1, %s5397_s12  }
  0x6c   : > { %s31_s24 = ssub.s32 %s5397_s12, %s5608_s22  ;;  %s34_s25 = sadd.s32 1, %s5393_s11 }
  0x6d   : > { %p32_p1 = scmp.eq.s32.totalorder %s31_s24, 0  ;;  %p41_p3 = scmp.ne.s32.totalorder %s5393_s11, %s5389_s10 }
  0x6e   : > { %p42_p8 = scmp.eq.s32.totalorder %s5397_s12, 0  ;;  %p47_p13 = scmp.ne.s32.totalorder %s5389_s10, %s5385_s30 }
  0x6f   : > { %s5619_s26 = scalar_select %p32_p1, %s5393_s11, %s34_s25  }
  0x70   : > { %p5621_p0 = por %p42_p8, %p41_p3  ;;  %p5852_p2 = scmp.eq.s32.totalorder %s5480_s15, 0 }
  0x71   : > { %p239_p5 = scmp.eq.s32.totalorder %s5480_s15, 1  ;;  %p245_p7 = scmp.eq.s32.totalorder %s3906_s9, 1 }
  0x72   : > { %p5627_p6 = por %p5852_p2, %p47_p13  ;;  %p4463_p9 = scmp.lt.s32.totalorder %s5397_s12, 2 }
  0x73   : > { %s329_s28 = sand.u32 1, %s5393_s11   ;;  %p5634_p4 = por %p239_p5, %p41_p3 }
  0x74   : > { %p5638_p10 = por %p245_p7, %p47_p13  ;;  %s3913_s18 = sshll.u32 %s329_s28, 5 }
  0x75   : > { %s5854_s29 = scalar_select %p5634_p4, 1, 0 }
  0x76   : > { %s5855_s13 = scalar_select %p5638_p10, 1, 0 }
  0x77   : > { %s4376_s21 = sshll.u32 %s5397_s12, 9  ;;  %s333_s14 = scalar_lea.vmem [#allocation2], %s3913_s18 }
  0x78   : > { %s5646_s20 = scalar_lea.hbm %s5831_s0, %s4376_s21  ;;  %s341_s9 = sshll.u32 %s333_s14, 4  ;;  %s5648_s9 = int_to_ptr.vmem [resolvable:$true] %s341_s9 }
  0x79   : > { %p5652_p11 = pnand %p4463_p9, %p5621_p0  ;;  %s330_s25 = scalar_lea.sflag [#allocation3], %s329_s28 }
  0x7a   : > { %s5293_s1 = scalar_lea.hbm %s5646_s20, 512  ;;  %s5298_s17 = scalar_lea.hbm %s5831_s0, 1024 }
  0x7b   : > { %p5294_p12 = scmp.ne.s32.totalorder %s5646_s20, %s5293_s1  ;;  %p5295_p1 = pneg %p5652_p11 }
  0x7c   : > { %p5299_p13 = scmp.lt.u32.totalorder %s5646_s20, %s5831_s0  ;;  %p5300_p0 = scmp.lt.u32.totalorder %s5298_s17, %s5293_s1 }
  0x7d   : > { %p5296_p3 = pnand %p5295_p1, %p5294_p12  ;;  %p5302_p5 = scmp.lt.u32.totalorder %s5293_s1, %s5646_s20 }
  0x7e   : > { %p5301_p2 = por %p5300_p0, %p5299_p13 }
  0x7f   : > { %p5297_p8 = pneg %p5296_p3 }
  0x80   : > { %p5303_p7 = por %p5302_p5, %p5301_p2 }
  0x82   : > { %p5304_p9 = pnand %p5303_p7, %p5297_p8 }
  0x84   : > { %5307 = shalt.err (!%p5304_p9)
}
  0x85   : > { %s5308_s28 = scalar_lea.vmem %s5648_s9, 512  ;;  %s5407_s14 = smov [#allocation2]  }
  0x86   : > { %p5309_p12 = scmp.ne.s32.totalorder %s5648_s9, %s5308_s28  ;;  %s5313_s18 = sshll.u32 %s5407_s14, 4  ;;  %s5314_s18 = int_to_ptr.vmem [resolvable:$false] %s5313_s18 }
  0x87   : > { %s5315_s21 = scalar_lea.vmem %s5314_s18, 1024  ;;  %p5316_p4 = scmp.lt.s32.totalorder %s5648_s9, %s5314_s18 }
  0x88   : > { %p5311_p3 = pnand %p5309_p12, %p5295_p1  ;;  %p5317_p13 = scmp.lt.s32.totalorder %s5315_s21, %s5308_s28 }
  0x8a   : > { %p5312_p10 = pneg %p5311_p3  ;;  %p5318_p0 = por %p5317_p13, %p5316_p4 }
  0x8c   : > { %p5319_p2 = pnand %p5318_p0, %p5312_p10 }
  0x8e   : > { %5322 = shalt.err (!%p5319_p2)
}
  0x8f   : > { %4454 = dma.hbm_to_vmem [thread:$0]  (!%p5652_p11), %s5646_s20, 512, %s5648_s9, %s330_s25  }
  0x90   : > { %p5857_p8 = scmp.ne.s32.totalorder %s5847_s16, 0 }
  0x91   : > { %s5684_s1 = sand.u32 (!%p5857_p8), 1, %s5389_s10  }
  0x92   : > { %350 = sbr.rel (%p5857_p8) target bundleno = 1372 (0x55c), region = 56  ;;  %s3917_s17 = sshll.u32 (!%p5857_p8), %s5684_s1, 5 }
  0x93   : > { %s353_s19 = scalar_lea.sflag (!%p5857_p8), [#allocation3], %s5684_s1  ;;  %s5688_s27 = scalar_lea.vmem (!%p5857_p8), [#allocation2], %s3917_s17 }
  0x99   : > { %5368 = dma.done.wait (%p5627_p6), %s353_s19, 512  }
  0x9a   : > { %5370 = vsyncadd (%p5627_p6), %s353_s19, 4294966784  ;;  %p5858_p4 = scmp.eq.s32.totalorder %s5480_s15, 0 }
  0x9c   : > { %5372 = dma.done.wait (%p5858_p4), [#allocation6], 32768   ;;  %p5859_p10 = pmov %p5858_p4 }
  0x9d   : > { %p5860_p11 = pmov %p5858_p4 }
  0x9e   : > { %5374 = vsyncadd (%p5859_p10), [#allocation6], 4294934528 }
  0x9f   : > { %5376 = dma.done.wait (%p5860_p11), [#allocation9], 24576   ;;  %p5861_p1 = pmov %p5858_p4 }
  0xa0   : > { %v4509_v0 = vld [vmem:[#allocation5 + $0x4] ss:$16 sps:$4 sm:$0xff]   ;;  %v4511_v1 = vld [vmem:[#allocation5] ss:$16 sps:$4 sm:$0xff]   ;;  %v408_v46 = vld [vmem:[%s5688_s27 + $0x8] sm:$0xff]  ;;  %s3922_s18 = sshll.u32 %s5684_s1, 4 }
  0xa1   : > { %5378 = vsyncadd (%p5861_p1), [#allocation9], 4294942720  ;;  %1205 = vmatprep.subr.bf16.mxu1 %v4509_v0  ;;  %v4512_v2 = vld [vmem:[#allocation5 + $0x204] ss:$16 sps:$4 sm:$0xff]   ;;  %v4514_v3 = vld [vmem:[#allocation5 + $0x200] ss:$16 sps:$4 sm:$0xff]   ;;  %v412_v48 = vpack.c.bf16 %v408_v46, %v408_v46 }
  0xa2   : > { %1206 = vmatpush1.bf16.msra.mxu1 %v4511_v1  ;;  %v4515_v4 = vld [vmem:[#allocation5 + $0x24] ss:$16 sps:$4 sm:$0xff]   ;;  %v4517_v5 = vld [vmem:[#allocation5 + $0x20] ss:$16 sps:$4 sm:$0xff]   ;;  %1246 = vmatprep.subr.bf16.mxu0 %v4512_v2  ;;  %v410_v50 = vld [vmem:[%s5688_s27 + $0x18] sm:$0xff]  ;;  %s4377_s21 = sshll.u32 %s5480_s15, 8 }
  0xa3   : > { %v4518_v6 = vld [vmem:[#allocation5 + $0x224] ss:$16 sps:$4 sm:$0xff]   ;;  %1247 = vmatpush1.bf16.msra.mxu0 %v4514_v3  ;;  %1207 = vmatprep.subr.bf16.mxu1 %v4515_v4  ;;  %v4520_v7 = vld [vmem:[#allocation5 + $0x220] ss:$16 sps:$4 sm:$0xff]   ;;  %v5704_v52 = vpack.c.bf16 %v410_v50, %v410_v50  ;;  %s406_s17 = scalar_lea.vmem [#allocation11], %s3922_s18  ;;  %s5862_s23 = sld [smem:[#allocation17_spill]] }
  0xa4   : > { %1248 = vmatprep.subr.bf16.mxu0 %v4518_v6  ;;  %v4521_v8 = vld [vmem:[#allocation5 + $0x44] ss:$16 sps:$4 sm:$0xff]   ;;  %v4523_v9 = vld [vmem:[#allocation5 + $0x40] ss:$16 sps:$4 sm:$0xff]   ;;  %1237 = vmatprep.mubr.bf16.mxu1 %v412_v48  ;;  %s3798_s19 = sshll.u32 %s406_s17, 4  ;;  %s3784_s15 = scalar_lea.sflag [#allocation4], %s5684_s1  ;;  %s5789_s19 = int_to_ptr.vmem [resolvable:$true] %s3798_s19 }
  0xa5   : > { %v4524_v10 = vld [vmem:[#allocation5 + $0x244] ss:$16 sps:$4 sm:$0xff]   ;;  %v4526_v12 = vld [vmem:[#allocation5 + $0x240] ss:$16 sps:$4 sm:$0xff]   ;;  %1278 = vmatprep.mubr.bf16.mxu0 %v5704_v52  ;;  %s5323_s9 = scalar_lea.vmem %s5789_s19, 256  ;;  %p5863_p5 = scmp.ne.s32.totalorder %s5854_s29, 0 }
  0xa6   : > { %1208 = vmatpush1.bf16.msra.mxu1 %v4517_v5  ;;  %v4527_v11 = vld [vmem:[#allocation5 + $0x64] ss:$16 sps:$4 sm:$0xff]   ;;  %v4529_v14 = vld [vmem:[#allocation5 + $0x60] ss:$16 sps:$4 sm:$0xff]   ;;  %v4607_v5 = vld [vmem:[#allocation5 + $0xc] ss:$16 sps:$4 sm:$0xff]   ;;  %p5324_p6 = scmp.ne.s32.totalorder %s5789_s19, %s5323_s9 }
  0xa7   : > { %1209 = vmatprep.subr.bf16.mxu1 %v4521_v8  ;;  %1249 = vmatpush1.bf16.msra.mxu0 %v4520_v7  ;;  %v4530_v13 = vld [vmem:[#allocation5 + $0x264] ss:$16 sps:$4 sm:$0xff]   ;;  %v4532_v16 = vld [vmem:[#allocation5 + $0x260] ss:$16 sps:$4 sm:$0xff]   ;;  %v4605_v8 = vld [vmem:[#allocation5 + $0x8] ss:$16 sps:$4 sm:$0xff]  }
  0xa8   : > { %1250 = vmatprep.subr.bf16.mxu0 %v4524_v10  ;;  %v4533_v15 = vld [vmem:[#allocation5 + $0x84] ss:$16 sps:$4 sm:$0xff]   ;;  %v4535_v18 = vld [vmem:[#allocation5 + $0x80] ss:$16 sps:$4 sm:$0xff]   ;;  %v4610_v10 = vld [vmem:[#allocation5 + $0x2c] ss:$16 sps:$4 sm:$0xff]   ;;  %p5325_p7 = pnand %p5324_p6, %p5863_p5 }
  0xa9   : > { %v4536_v17 = vld [vmem:[#allocation5 + $0x284] ss:$16 sps:$4 sm:$0xff]   ;;  %v4538_v20 = vld [vmem:[#allocation5 + $0x280] ss:$16 sps:$4 sm:$0xff]   ;;  %s5787_s20 = scalar_lea.hbm %s5862_s23, %s4377_s21  ;;  %s5408_s24 = smov [#allocation11]  }
  0xaa   : > { %1210 = vmatpush1.bf16.msra.mxu1 %v4523_v9  ;;  %v4539_v19 = vld [vmem:[#allocation5 + $0xa4] ss:$16 sps:$4 sm:$0xff]   ;;  %v4541_v22 = vld [vmem:[#allocation5 + $0xa0] ss:$16 sps:$4 sm:$0xff]   ;;  %p5326_p9 = pneg %p5325_p7  ;;  %s5327_s25 = sshll.u32 %s5408_s24, 4  ;;  %s5328_s25 = int_to_ptr.vmem [resolvable:$false] %s5327_s25 }
  0xab   : > { %1211 = vmatprep.subr.bf16.mxu1 %v4527_v11  ;;  %1251 = vmatpush1.bf16.msra.mxu0 %v4526_v12  ;;  %v4542_v21 = vld [vmem:[#allocation5 + $0x2a4] ss:$16 sps:$4 sm:$0xff]   ;;  %v4544_v24 = vld [vmem:[#allocation5 + $0x2a0] ss:$16 sps:$4 sm:$0xff]   ;;  %v4608_v11 = vld [vmem:[#allocation5 + $0x28] ss:$16 sps:$4 sm:$0xff]   ;;  %p5330_p12 = scmp.lt.s32.totalorder %s5789_s19, %s5328_s25 }
  0xac   : > { %1252 = vmatprep.subr.bf16.mxu0 %v4530_v13  ;;  %v4545_v23 = vld [vmem:[#allocation5 + $0xc4] ss:$16 sps:$4 sm:$0xff]   ;;  %v4547_v26 = vld [vmem:[#allocation5 + $0xc0] ss:$16 sps:$4 sm:$0xff]   ;;  %v4613_v12 = vld [vmem:[#allocation5 + $0x4c] ss:$16 sps:$4 sm:$0xff]  }
  0xad   : > { %v4548_v25 = vld [vmem:[#allocation5 + $0x2c4] ss:$16 sps:$4 sm:$0xff]   ;;  %v4550_v28 = vld [vmem:[#allocation5 + $0x2c0] ss:$16 sps:$4 sm:$0xff]   ;;  %v4611_v13 = vld [vmem:[#allocation5 + $0x48] ss:$16 sps:$4 sm:$0xff]  }
  0xae   : > { %1212 = vmatpush1.bf16.msra.mxu1 %v4529_v14  ;;  %v4551_v27 = vld [vmem:[#allocation5 + $0xe4] ss:$16 sps:$4 sm:$0xff]   ;;  %v4553_v30 = vld [vmem:[#allocation5 + $0xe0] ss:$16 sps:$4 sm:$0xff]   ;;  %v4616_v14 = vld [vmem:[#allocation5 + $0x6c] ss:$16 sps:$4 sm:$0xff]  }
  0xaf   : > { %1213 = vmatprep.subr.bf16.mxu1 %v4533_v15  ;;  %1253 = vmatpush1.bf16.msra.mxu0 %v4532_v16  ;;  %v4554_v29 = vld [vmem:[#allocation5 + $0x2e4] ss:$16 sps:$4 sm:$0xff]   ;;  %v4556_v32 = vld [vmem:[#allocation5 + $0x2e0] ss:$16 sps:$4 sm:$0xff]   ;;  %v4614_v15 = vld [vmem:[#allocation5 + $0x68] ss:$16 sps:$4 sm:$0xff]  }
  0xb0   : > { %1254 = vmatprep.subr.bf16.mxu0 %v4536_v17  ;;  %v4557_v31 = vld [vmem:[#allocation5 + $0x104] ss:$16 sps:$4 sm:$0xff]   ;;  %v4559_v34 = vld [vmem:[#allocation5 + $0x100] ss:$16 sps:$4 sm:$0xff]   ;;  %v4619_v16 = vld [vmem:[#allocation5 + $0x8c] ss:$16 sps:$4 sm:$0xff]  }
  0xb1   : > { %v4560_v33 = vld [vmem:[#allocation5 + $0x304] ss:$16 sps:$4 sm:$0xff]   ;;  %v4562_v36 = vld [vmem:[#allocation5 + $0x300] ss:$16 sps:$4 sm:$0xff]   ;;  %v4617_v17 = vld [vmem:[#allocation5 + $0x88] ss:$16 sps:$4 sm:$0xff]  }
  0xb2   : > { %1214 = vmatpush1.bf16.msra.mxu1 %v4535_v18  ;;  %v4563_v35 = vld [vmem:[#allocation5 + $0x124] ss:$16 sps:$4 sm:$0xff]   ;;  %v4565_v38 = vld [vmem:[#allocation5 + $0x120] ss:$16 sps:$4 sm:$0xff]   ;;  %v4622_v18 = vld [vmem:[#allocation5 + $0xac] ss:$16 sps:$4 sm:$0xff]  }
  0xb3   : > { %1215 = vmatprep.subr.bf16.mxu1 %v4539_v19  ;;  %1255 = vmatpush1.bf16.msra.mxu0 %v4538_v20  ;;  %v4566_v37 = vld [vmem:[#allocation5 + $0x324] ss:$16 sps:$4 sm:$0xff]   ;;  %v4568_v40 = vld [vmem:[#allocation5 + $0x320] ss:$16 sps:$4 sm:$0xff]   ;;  %v4620_v19 = vld [vmem:[#allocation5 + $0xa8] ss:$16 sps:$4 sm:$0xff]  }
  0xb4   : > { %1256 = vmatprep.subr.bf16.mxu0 %v4542_v21  ;;  %v4569_v39 = vld [vmem:[#allocation5 + $0x144] ss:$16 sps:$4 sm:$0xff]   ;;  %v4571_v42 = vld [vmem:[#allocation5 + $0x140] ss:$16 sps:$4 sm:$0xff]   ;;  %v4625_v20 = vld [vmem:[#allocation5 + $0xcc] ss:$16 sps:$4 sm:$0xff]  }
  0xb5   : > { %v4572_v41 = vld [vmem:[#allocation5 + $0x344] ss:$16 sps:$4 sm:$0xff]   ;;  %v4574_v44 = vld [vmem:[#allocation5 + $0x340] ss:$16 sps:$4 sm:$0xff]   ;;  %v4623_v21 = vld [vmem:[#allocation5 + $0xc8] ss:$16 sps:$4 sm:$0xff]  }
  0xb6   : > { %1216 = vmatpush1.bf16.msra.mxu1 %v4541_v22  ;;  %v4575_v43 = vld [vmem:[#allocation5 + $0x164] ss:$16 sps:$4 sm:$0xff]   ;;  %v4577_v47 = vld [vmem:[#allocation5 + $0x160] ss:$16 sps:$4 sm:$0xff]   ;;  %s5329_s28 = scalar_lea.vmem %s5328_s25, 512 }
  0xb7   : > { %1217 = vmatprep.subr.bf16.mxu1 %v4545_v23  ;;  %1257 = vmatpush1.bf16.msra.mxu0 %v4544_v24  ;;  %v4578_v45 = vld [vmem:[#allocation5 + $0x364] ss:$16 sps:$4 sm:$0xff]   ;;  %v4580_v51 = vld [vmem:[#allocation5 + $0x360] ss:$16 sps:$4 sm:$0xff]   ;;  %v4628_v24 = vld [vmem:[#allocation5 + $0xec] ss:$16 sps:$4 sm:$0xff]   ;;  %p5331_p3 = scmp.lt.s32.totalorder %s5329_s28, %s5323_s9 }
  0xb8   : > { %1258 = vmatprep.subr.bf16.mxu0 %v4548_v25  ;;  %v4581_v49 = vld [vmem:[#allocation5 + $0x184] ss:$16 sps:$4 sm:$0xff]   ;;  %v4583_v54 = vld [vmem:[#allocation5 + $0x180] ss:$16 sps:$4 sm:$0xff]  }
  0xb9   : > { %v4584_v53 = vld [vmem:[#allocation5 + $0x384] ss:$16 sps:$4 sm:$0xff]   ;;  %v4586_v56 = vld [vmem:[#allocation5 + $0x380] ss:$16 sps:$4 sm:$0xff]   ;;  %p5332_p13 = por %p5331_p3, %p5330_p12 }
  0xba   : > { %1218 = vmatpush1.bf16.msra.mxu1 %v4547_v26  ;;  %v4587_v55 = vld [vmem:[#allocation5 + $0x1a4] ss:$16 sps:$4 sm:$0xff]   ;;  %v4589_v58 = vld [vmem:[#allocation5 + $0x1a0] ss:$16 sps:$4 sm:$0xff]  }
  0xbb   : > { %1219 = vmatprep.subr.bf16.mxu1 %v4551_v27  ;;  %1259 = vmatpush1.bf16.msra.mxu0 %v4550_v28  ;;  %v4590_v57 = vld [vmem:[#allocation5 + $0x3a4] ss:$16 sps:$4 sm:$0xff]   ;;  %v4592_v60 = vld [vmem:[#allocation5 + $0x3a0] ss:$16 sps:$4 sm:$0xff]   ;;  %v4626_v27 = vld [vmem:[#allocation5 + $0xe8] ss:$16 sps:$4 sm:$0xff]   ;;  %p5333_p0 = pnand %p5332_p13, %p5326_p9 }
  0xbc   : > { %1260 = vmatprep.subr.bf16.mxu0 %v4554_v29  ;;  %v4593_v59 = vld [vmem:[#allocation5 + $0x1c4] ss:$16 sps:$4 sm:$0xff]   ;;  %v4595_v62 = vld [vmem:[#allocation5 + $0x1c0] ss:$16 sps:$4 sm:$0xff]   ;;  %v4631_v28 = vld [vmem:[#allocation5 + $0x10c] ss:$16 sps:$4 sm:$0xff]  }
  0xbd   : > { %v4596_v61 = vld [vmem:[#allocation5 + $0x3c4] ss:$16 sps:$4 sm:$0xff]   ;;  %v4598_v0 = vld [vmem:[#allocation5 + $0x3c0] ss:$16 sps:$4 sm:$0xff]  }
  0xbe   : > { %1220 = vmatpush1.bf16.msra.mxu1 %v4553_v30  ;;  %v4599_v63 = vld [vmem:[#allocation5 + $0x1e4] ss:$16 sps:$4 sm:$0xff]   ;;  %v4601_v1 = vld [vmem:[#allocation5 + $0x1e0] ss:$16 sps:$4 sm:$0xff]  }
  0xbf   : > { %1221 = vmatprep.subr.bf16.mxu1 %v4557_v31  ;;  %1261 = vmatpush1.bf16.msra.mxu0 %v4556_v32  ;;  %v4602_v2 = vld [vmem:[#allocation5 + $0x3e4] ss:$16 sps:$4 sm:$0xff]   ;;  %v4604_v3 = vld [vmem:[#allocation5 + $0x3e0] ss:$16 sps:$4 sm:$0xff]   ;;  %v4629_v31 = vld [vmem:[#allocation5 + $0x108] ss:$16 sps:$4 sm:$0xff]  }
  0xc0   : > { %1262 = vmatprep.subr.bf16.mxu0 %v4560_v33  ;;  %v407_v4 = vld [vmem:[%s5688_s27] sm:$0xff]  ;;  %v409_v6 = vld [vmem:[%s5688_s27 + $0x10] sm:$0xff]  ;;  %v4634_v33 = vld [vmem:[#allocation5 + $0x12c] ss:$16 sps:$4 sm:$0xff]  }
  0xc1   : > { %v5709_v7 = vpack.c.bf16 %v407_v4, %v407_v4  ;;  %v5711_v9 = vpack.c.bf16 %v409_v6, %v409_v6  ;;  %v4701_v22 = vld [vmem:[#allocation7] ss:$16 sps:$4 sm:$0xff]   ;;  %v4703_v23 = vld [vmem:[#allocation7 + $0x4] ss:$16 sps:$4 sm:$0xff]   ;;  %v4656_v4 = vld [vmem:[#allocation5 + $0x228] ss:$16 sps:$4 sm:$0xff]  }
  0xc2   : > { %1222 = vmatpush1.bf16.msra.mxu1 %v4559_v34  ;;  %v4707_v25 = vld [vmem:[#allocation7 + $0x20] ss:$16 sps:$4 sm:$0xff]   ;;  %v4709_v26 = vld [vmem:[#allocation7 + $0x24] ss:$16 sps:$4 sm:$0xff]   ;;  %v4661_v6 = vld [vmem:[#allocation5 + $0x24c] ss:$16 sps:$4 sm:$0xff]  }
  0xc3   : > { %1223 = vmatprep.subr.bf16.mxu1 %v4563_v35  ;;  %1263 = vmatpush1.bf16.msra.mxu0 %v4562_v36  ;;  %v4715_v29 = vld [vmem:[#allocation7 + $0x44] ss:$16 sps:$4 sm:$0xff]   ;;  %v4713_v30 = vld [vmem:[#allocation7 + $0x40] ss:$16 sps:$4 sm:$0xff]   ;;  %v4632_v35 = vld [vmem:[#allocation5 + $0x128] ss:$16 sps:$4 sm:$0xff]  }
  0xc4   : > { %1264 = vmatprep.subr.bf16.mxu0 %v4566_v37  ;;  %v4721_v32 = vld [vmem:[#allocation7 + $0x64] ss:$16 sps:$4 sm:$0xff]   ;;  %v4719_v34 = vld [vmem:[#allocation7 + $0x60] ss:$16 sps:$4 sm:$0xff]   ;;  %v4637_v37 = vld [vmem:[#allocation5 + $0x14c] ss:$16 sps:$4 sm:$0xff]  }
  0xc5   : > { %v4727_v36 = vld [vmem:[#allocation7 + $0x84] ss:$16 sps:$4 sm:$0xff]   ;;  %v4737_v46 = vld [vmem:[#allocation7 + $0xc0] ss:$16 sps:$4 sm:$0xff]  }
  0xc6   : > { %1224 = vmatpush1.bf16.msra.mxu1 %v4565_v38  ;;  %v4725_v38 = vld [vmem:[#allocation7 + $0x80] ss:$16 sps:$4 sm:$0xff]  }
  0xc7   : > { %1225 = vmatprep.subr.bf16.mxu1 %v4569_v39  ;;  %1265 = vmatpush1.bf16.msra.mxu0 %v4568_v40  ;;  %v4635_v39 = vld [vmem:[#allocation5 + $0x148] ss:$16 sps:$4 sm:$0xff]   ;;  %v4733_v40 = vld [vmem:[#allocation7 + $0xa4] ss:$16 sps:$4 sm:$0xff]   ;;  %v4743_v50 = vld [vmem:[#allocation7 + $0xe0] ss:$16 sps:$4 sm:$0xff]  }
  0xc8   : > { %1266 = vmatprep.subr.bf16.mxu0 %v4572_v41  ;;  %v4640_v41 = vld [vmem:[#allocation5 + $0x16c] ss:$16 sps:$4 sm:$0xff]  }
  0xca   : > { %1226 = vmatpush1.bf16.msra.mxu1 %v4571_v42  ;;  %v4731_v42 = vld [vmem:[#allocation7 + $0xa0] ss:$16 sps:$4 sm:$0xff]  }
  0xcb   : > { %1227 = vmatprep.subr.bf16.mxu1 %v4575_v43  ;;  %1267 = vmatpush1.bf16.msra.mxu0 %v4574_v44  ;;  %v4638_v43 = vld [vmem:[#allocation5 + $0x168] ss:$16 sps:$4 sm:$0xff]   ;;  %v4739_v44 = vld [vmem:[#allocation7 + $0xc4] ss:$16 sps:$4 sm:$0xff]  }
  0xcc   : > { %1268 = vmatprep.subr.bf16.mxu0 %v4578_v45  ;;  %v4643_v45 = vld [vmem:[#allocation5 + $0x18c] ss:$16 sps:$4 sm:$0xff]  }
  0xce   : > { %1228 = vmatpush1.bf16.msra.mxu1 %v4577_v47  ;;  %v4641_v47 = vld [vmem:[#allocation5 + $0x188] ss:$16 sps:$4 sm:$0xff]  }
  0xcf   : > { %1229 = vmatprep.subr.bf16.mxu1 %v4581_v49  ;;  %1269 = vmatpush1.bf16.msra.mxu0 %v4580_v51  ;;  %v4646_v49 = vld [vmem:[#allocation5 + $0x1ac] ss:$16 sps:$4 sm:$0xff]   ;;  %v4644_v51 = vld [vmem:[#allocation5 + $0x1a8] ss:$16 sps:$4 sm:$0xff]  }
  0xd0   : > { %1270 = vmatprep.subr.bf16.mxu0 %v4584_v53  ;;  %v4751_v53 = vld [vmem:[#allocation7 + $0x104] ss:$16 sps:$4 sm:$0xff]  }
  0xd2   : > { %1230 = vmatpush1.bf16.msra.mxu1 %v4583_v54  ;;  %v4649_v54 = vld [vmem:[#allocation5 + $0x1cc] ss:$16 sps:$4 sm:$0xff]  }
  0xd3   : > { %1231 = vmatprep.subr.bf16.mxu1 %v4587_v55  ;;  %1271 = vmatpush1.bf16.msra.mxu0 %v4586_v56  ;;  %v4749_v55 = vld [vmem:[#allocation7 + $0x100] ss:$16 sps:$4 sm:$0xff]   ;;  %v4647_v56 = vld [vmem:[#allocation5 + $0x1c8] ss:$16 sps:$4 sm:$0xff]  }
  0xd4   : > { %1272 = vmatprep.subr.bf16.mxu0 %v4590_v57  ;;  %v4757_v57 = vld [vmem:[#allocation7 + $0x124] ss:$16 sps:$4 sm:$0xff]  }
  0xd6   : > { %1232 = vmatpush1.bf16.msra.mxu1 %v4589_v58  ;;  %v4652_v58 = vld [vmem:[#allocation5 + $0x1ec] ss:$16 sps:$4 sm:$0xff]  }
  0xd7   : > { %1233 = vmatprep.subr.bf16.mxu1 %v4593_v59  ;;  %1273 = vmatpush1.bf16.msra.mxu0 %v4592_v60  ;;  %v4650_v59 = vld [vmem:[#allocation5 + $0x1e8] ss:$16 sps:$4 sm:$0xff]   ;;  %v4755_v60 = vld [vmem:[#allocation7 + $0x120] ss:$16 sps:$4 sm:$0xff]  }
  0xd8   : > { %1274 = vmatprep.subr.bf16.mxu0 %v4596_v61  ;;  %v4655_v61 = vld [vmem:[#allocation5 + $0x20c] ss:$16 sps:$4 sm:$0xff]  }
  0xda   : > { %1234 = vmatpush1.bf16.msra.mxu1 %v4595_v62  ;;  %v4763_v62 = vld [vmem:[#allocation7 + $0x144] ss:$16 sps:$4 sm:$0xff]  }
  0xdb   : > { %1235 = vmatprep.subr.bf16.mxu1 %v4599_v63  ;;  %1275 = vmatpush1.bf16.msra.mxu0 %v4598_v0  ;;  %v4761_v63 = vld [vmem:[#allocation7 + $0x140] ss:$16 sps:$4 sm:$0xff]   ;;  %v4653_v0 = vld [vmem:[#allocation5 + $0x208] ss:$16 sps:$4 sm:$0xff]  }
  0xdc   : > { %1276 = vmatprep.subr.bf16.mxu0 %v4602_v2  ;;  %v4769_v2 = vld [vmem:[#allocation7 + $0x164] ss:$16 sps:$4 sm:$0xff]  }
  0xde   : > { %1236 = vmatpush1.bf16.msra.mxu1 %v4601_v1  ;;  %v4658_v1 = vld [vmem:[#allocation5 + $0x22c] ss:$16 sps:$4 sm:$0xff]  }
  0xdf   : > { %1287 = vmatprep.subr.bf16.mxu1 %v4607_v5  ;;  %1277 = vmatpush1.bf16.msra.mxu0 %v4604_v3  ;;  %v4767_v3 = vld [vmem:[#allocation7 + $0x160] ss:$16 sps:$4 sm:$0xff]   ;;  %v4775_v5 = vld [vmem:[#allocation7 + $0x184] ss:$16 sps:$4 sm:$0xff]  }
  0xe0   : > { %2167 = vmatprep.subr.bf16.mxu0 %v4703_v23  ;;  %v4793_v23 = vld [vmem:[#allocation7 + $0x1e4] ss:$16 sps:$4 sm:$0xff]  }
  0xe1   : > { %1238 = vmatmul.mubr.bf16.vlgmr.msra.gmra.mrb[0].mxu1 %v5709_v7 }
  0xe2   : > { %1288 = vmatpush1.bf16.msra.mxu1 %v4605_v8  ;;  %1319 = vmatprep.mubr.bf16.mxu1 %v412_v48  ;;  %v4745_v48 = vld [vmem:[#allocation7 + $0xe4] ss:$16 sps:$4 sm:$0xff]   ;;  %v4773_v8 = vld [vmem:[#allocation7 + $0x180] ss:$16 sps:$4 sm:$0xff]  }
  0xe3   : > { %1279 = vmatmul.mubr.bf16.vlgmr.msra.gmra.mrb[0].mxu0 %v5711_v9  ;;  %1289 = vmatprep.subr.bf16.mxu1 %v4610_v10  ;;  %v4659_v10 = vld [vmem:[#allocation5 + $0x248] ss:$16 sps:$4 sm:$0xff]  }
  0xe4   : > { %2168 = vmatpush1.bf16.msra.mxu0 %v4701_v22  ;;  %v4674_v22 = vld [vmem:[#allocation5 + $0x2e8] ss:$16 sps:$4 sm:$0xff]  }
  0xe5   : > { %2169 = vmatprep.subr.bf16.mxu0 %v4709_v26  ;;  %v4677_v26 = vld [vmem:[#allocation5 + $0x308] ss:$16 sps:$4 sm:$0xff]  }
  0xe6   : > { %1290 = vmatpush1.bf16.msra.mxu1 %v4608_v11  ;;  %v4781_v11 = vld [vmem:[#allocation7 + $0x1a4] ss:$16 sps:$4 sm:$0xff]  }
  0xe7   : > { %1291 = vmatprep.subr.bf16.mxu1 %v4613_v12  ;;  %v4664_v12 = vld [vmem:[#allocation5 + $0x26c] ss:$16 sps:$4 sm:$0xff]  }
  0xe8   : > { %2170 = vmatpush1.bf16.msra.mxu0 %v4707_v25  ;;  %v4791_v25 = vld [vmem:[#allocation7 + $0x1e0] ss:$16 sps:$4 sm:$0xff]  }
  0xe9   : > { %2171 = vmatprep.subr.bf16.mxu0 %v4715_v29  ;;  %v4680_v29 = vld [vmem:[#allocation5 + $0x328] ss:$16 sps:$4 sm:$0xff]  }
  0xea   : > { %1292 = vmatpush1.bf16.msra.mxu1 %v4611_v13  ;;  %v4779_v13 = vld [vmem:[#allocation7 + $0x1a0] ss:$16 sps:$4 sm:$0xff]  }
  0xeb   : > { %1293 = vmatprep.subr.bf16.mxu1 %v4616_v14  ;;  %v4662_v14 = vld [vmem:[#allocation5 + $0x268] ss:$16 sps:$4 sm:$0xff]  }
  0xec   : > { %2172 = vmatpush1.bf16.msra.mxu0 %v4713_v30  ;;  %v4685_v30 = vld [vmem:[#allocation5 + $0x34c] ss:$16 sps:$4 sm:$0xff]  }
  0xed   : > { %2173 = vmatprep.subr.bf16.mxu0 %v4721_v32  ;;  %v4688_v32 = vld [vmem:[#allocation5 + $0x36c] ss:$16 sps:$4 sm:$0xff]  }
  0xee   : > { %1294 = vmatpush1.bf16.msra.mxu1 %v4614_v15  ;;  %v4667_v15 = vld [vmem:[#allocation5 + $0x28c] ss:$16 sps:$4 sm:$0xff]  }
  0xef   : > { %1295 = vmatprep.subr.bf16.mxu1 %v4619_v16  ;;  %v4670_v16 = vld [vmem:[#allocation5 + $0x2ac] ss:$16 sps:$4 sm:$0xff]  }
  0xf0   : > { %2174 = vmatpush1.bf16.msra.mxu0 %v4719_v34  ;;  %v4691_v34 = vld [vmem:[#allocation5 + $0x38c] ss:$16 sps:$4 sm:$0xff]  }
  0xf1   : > { %2175 = vmatprep.subr.bf16.mxu0 %v4727_v36  ;;  %v4694_v36 = vld [vmem:[#allocation5 + $0x3ac] ss:$16 sps:$4 sm:$0xff]  }
  0xf2   : > { %1296 = vmatpush1.bf16.msra.mxu1 %v4617_v17  ;;  %v4673_v17 = vld [vmem:[#allocation5 + $0x2cc] ss:$16 sps:$4 sm:$0xff]  }
  0xf3   : > { %1297 = vmatprep.subr.bf16.mxu1 %v4622_v18  ;;  %v4671_v18 = vld [vmem:[#allocation5 + $0x2c8] ss:$16 sps:$4 sm:$0xff]  }
  0xf4   : > { %2176 = vmatpush1.bf16.msra.mxu0 %v4725_v38  ;;  %v4697_v38 = vld [vmem:[#allocation5 + $0x3cc] ss:$16 sps:$4 sm:$0xff]  }
  0xf5   : > { %2177 = vmatprep.subr.bf16.mxu0 %v4733_v40  ;;  %v4700_v40 = vld [vmem:[#allocation5 + $0x3ec] ss:$16 sps:$4 sm:$0xff]  }
  0xf6   : > { %1298 = vmatpush1.bf16.msra.mxu1 %v4620_v19  ;;  %v4787_v19 = vld [vmem:[#allocation7 + $0x1c4] ss:$16 sps:$4 sm:$0xff]  }
  0xf7   : > { %1299 = vmatprep.subr.bf16.mxu1 %v4625_v20  ;;  %v4676_v20 = vld [vmem:[#allocation5 + $0x2ec] ss:$16 sps:$4 sm:$0xff]  }
  0xf8   : > { %2178 = vmatpush1.bf16.msra.mxu0 %v4731_v42  ;;  %v4706_v42 = vld [vmem:[#allocation7 + $0xc] ss:$16 sps:$4 sm:$0xff]  }
  0xf9   : > { %2179 = vmatprep.subr.bf16.mxu0 %v4739_v44  ;;  %v4712_v44 = vld [vmem:[#allocation7 + $0x2c] ss:$16 sps:$4 sm:$0xff]  }
  0xfa   : > { %1300 = vmatpush1.bf16.msra.mxu1 %v4623_v21  ;;  %v4785_v21 = vld [vmem:[#allocation7 + $0x1c0] ss:$16 sps:$4 sm:$0xff]  }
  0xfb   : > { %1301 = vmatprep.subr.bf16.mxu1 %v4628_v24  ;;  %v4679_v24 = vld [vmem:[#allocation5 + $0x30c] ss:$16 sps:$4 sm:$0xff]  }
  0xfc   : > { %2180 = vmatpush1.bf16.msra.mxu0 %v4737_v46  ;;  %v4718_v46 = vld [vmem:[#allocation7 + $0x4c] ss:$16 sps:$4 sm:$0xff]  }
  0xfd   : > { %2181 = vmatprep.subr.bf16.mxu0 %v4745_v48  ;;  %v4724_v48 = vld [vmem:[#allocation7 + $0x6c] ss:$16 sps:$4 sm:$0xff]  }
  0xfe   : > { %1302 = vmatpush1.bf16.msra.mxu1 %v4626_v27  ;;  %v4682_v27 = vld [vmem:[#allocation5 + $0x32c] ss:$16 sps:$4 sm:$0xff]  }
  0xff   : > { %1303 = vmatprep.subr.bf16.mxu1 %v4631_v28  ;;  %v4799_v28 = vld [vmem:[#allocation7 + $0x204] ss:$16 sps:$4 sm:$0xff]  }
 0x100   : > { %2182 = vmatpush1.bf16.msra.mxu0 %v4743_v50  ;;  %v4730_v50 = vld [vmem:[#allocation7 + $0x8c] ss:$16 sps:$4 sm:$0xff]  }
 0x101   : > { %2183 = vmatprep.subr.bf16.mxu0 %v4751_v53  ;;  %v4736_v53 = vld [vmem:[#allocation7 + $0xac] ss:$16 sps:$4 sm:$0xff]  }
 0x102   : > { %1304 = vmatpush1.bf16.msra.mxu1 %v4629_v31  ;;  %v4683_v31 = vld [vmem:[#allocation5 + $0x348] ss:$16 sps:$4 sm:$0xff]  }
 0x103   : > { %1305 = vmatprep.subr.bf16.mxu1 %v4634_v33  ;;  %v4686_v33 = vld [vmem:[#allocation5 + $0x368] ss:$16 sps:$4 sm:$0xff]  }
 0x104   : > { %2184 = vmatpush1.bf16.msra.mxu0 %v4749_v55  ;;  %v4742_v55 = vld [vmem:[#allocation7 + $0xcc] ss:$16 sps:$4 sm:$0xff]  }
 0x105   : > { %2185 = vmatprep.subr.bf16.mxu0 %v4757_v57  ;;  %v4746_v57 = vld [vmem:[#allocation7 + $0xe8] ss:$16 sps:$4 sm:$0xff]  }
 0x106   : > { %1306 = vmatpush1.bf16.msra.mxu1 %v4632_v35  ;;  %v4689_v35 = vld [vmem:[#allocation5 + $0x388] ss:$16 sps:$4 sm:$0xff]  }
 0x107   : > { %1307 = vmatprep.subr.bf16.mxu1 %v4637_v37  ;;  %v4692_v37 = vld [vmem:[#allocation5 + $0x3a8] ss:$16 sps:$4 sm:$0xff]  }
 0x108   : > { %2186 = vmatpush1.bf16.msra.mxu0 %v4755_v60  ;;  %v4760_v60 = vld [vmem:[#allocation7 + $0x12c] ss:$16 sps:$4 sm:$0xff]  }
 0x109   : > { %2187 = vmatprep.subr.bf16.mxu0 %v4763_v62  ;;  %v4766_v62 = vld [vmem:[#allocation7 + $0x14c] ss:$16 sps:$4 sm:$0xff]  }
 0x10a   : > { %1308 = vmatpush1.bf16.msra.mxu1 %v4635_v39  ;;  %v4695_v39 = vld [vmem:[#allocation5 + $0x3c8] ss:$16 sps:$4 sm:$0xff]  }
 0x10b   : > { %1309 = vmatprep.subr.bf16.mxu1 %v4640_v41  ;;  %v4698_v41 = vld [vmem:[#allocation5 + $0x3e8] ss:$16 sps:$4 sm:$0xff]  }
 0x10c   : > { %2188 = vmatpush1.bf16.msra.mxu0 %v4761_v63  ;;  %v4764_v63 = vld [vmem:[#allocation7 + $0x148] ss:$16 sps:$4 sm:$0xff]  }
 0x10d   : > { %2189 = vmatprep.subr.bf16.mxu0 %v4769_v2  ;;  %v4778_v2 = vld [vmem:[#allocation7 + $0x18c] ss:$16 sps:$4 sm:$0xff]  }
 0x10e   : > { %1310 = vmatpush1.bf16.msra.mxu1 %v4638_v43  ;;  %v4704_v43 = vld [vmem:[#allocation7 + $0x8] ss:$16 sps:$4 sm:$0xff]  }
 0x10f   : > { %1311 = vmatprep.subr.bf16.mxu1 %v4643_v45  ;;  %v4710_v45 = vld [vmem:[#allocation7 + $0x28] ss:$16 sps:$4 sm:$0xff]  }
 0x110   : > { %2190 = vmatpush1.bf16.msra.mxu0 %v4767_v3  ;;  %v4776_v3 = vld [vmem:[#allocation7 + $0x188] ss:$16 sps:$4 sm:$0xff]  }
 0x111   : > { %2191 = vmatprep.subr.bf16.mxu0 %v4775_v5  ;;  %v4782_v5 = vld [vmem:[#allocation7 + $0x1a8] ss:$16 sps:$4 sm:$0xff]  }
 0x112   : > { %1312 = vmatpush1.bf16.msra.mxu1 %v4641_v47  ;;  %v4716_v47 = vld [vmem:[#allocation7 + $0x48] ss:$16 sps:$4 sm:$0xff]  }
 0x113   : > { %1313 = vmatprep.subr.bf16.mxu1 %v4646_v49  ;;  %v4722_v49 = vld [vmem:[#allocation7 + $0x68] ss:$16 sps:$4 sm:$0xff]  }
 0x114   : > { %2192 = vmatpush1.bf16.msra.mxu0 %v4773_v8  ;;  %v4788_v8 = vld [vmem:[#allocation7 + $0x1c8] ss:$16 sps:$4 sm:$0xff]  }
 0x115   : > { %2193 = vmatprep.subr.bf16.mxu0 %v4781_v11  ;;  %v4794_v11 = vld [vmem:[#allocation7 + $0x1e8] ss:$16 sps:$4 sm:$0xff]  }
 0x116   : > { %1314 = vmatpush1.bf16.msra.mxu1 %v4644_v51  ;;  %v4728_v51 = vld [vmem:[#allocation7 + $0x88] ss:$16 sps:$4 sm:$0xff]  }
 0x117   : > { %1315 = vmatprep.subr.bf16.mxu1 %v4649_v54  ;;  %v4734_v54 = vld [vmem:[#allocation7 + $0xa8] ss:$16 sps:$4 sm:$0xff]  }
 0x118   : > { %2194 = vmatpush1.bf16.msra.mxu0 %v4779_v13  ;;  %v545_v13 = vlaneseq }
 0x119   : > { %2195 = vmatprep.subr.bf16.mxu0 %v4787_v19 }
 0x11a   : > { %1316 = vmatpush1.bf16.msra.mxu1 %v4647_v56  ;;  %v4748_v56 = vld [vmem:[#allocation7 + $0xec] ss:$16 sps:$4 sm:$0xff]  }
 0x11b   : > { %1317 = vmatprep.subr.bf16.mxu1 %v4652_v58  ;;  %v4754_v58 = vld [vmem:[#allocation7 + $0x10c] ss:$16 sps:$4 sm:$0xff]  }
 0x11c   : > { %2196 = vmatpush1.bf16.msra.mxu0 %v4785_v21 }
 0x11d   : > { %2197 = vmatprep.subr.bf16.mxu0 %v4793_v23 }
 0x11e   : > { %1318 = vmatpush1.bf16.msra.mxu1 %v4650_v59  ;;  %v4752_v59 = vld [vmem:[#allocation7 + $0x108] ss:$16 sps:$4 sm:$0xff]  }
 0x11f   : > { %1328 = vmatprep.subr.bf16.mxu1 %v4655_v61  ;;  %v4758_v61 = vld [vmem:[#allocation7 + $0x128] ss:$16 sps:$4 sm:$0xff]  }
 0x120   : > { %2198 = vmatpush1.bf16.msra.mxu0 %v4791_v25 }
 0x121   : > { %1320 = vmatmul.mubr.bf16.vlgmr.msra.gmra.mrb[4].mxu1 %v5709_v7  ;;  %v4665_v7 = vld [vmem:[#allocation5 + $0x288] ss:$16 sps:$4 sm:$0xff]   ;;  %2208 = vmatprep.subr.bf16.mxu0 %v4799_v28 }
 0x122   : > { %1329 = vmatpush1.bf16.msra.mxu1 %v4653_v0  ;;  %1360 = vmatprep.mubr.bf16.mxu1 %v5704_v52  ;;  %v4668_v52 = vld [vmem:[#allocation5 + $0x2a8] ss:$16 sps:$4 sm:$0xff]   ;;  %v4772_v0 = vld [vmem:[#allocation7 + $0x16c] ss:$16 sps:$4 sm:$0xff]  }
 0x123   : > { %1330 = vmatprep.subr.bf16.mxu1 %v4658_v1  ;;  %v4770_v1 = vld [vmem:[#allocation7 + $0x168] ss:$16 sps:$4 sm:$0xff]  }
 0x126   : > { %1331 = vmatpush1.bf16.msra.mxu1 %v4656_v4  ;;  %v4784_v4 = vld [vmem:[#allocation7 + $0x1ac] ss:$16 sps:$4 sm:$0xff]  }
 0x127   : > { %1332 = vmatprep.subr.bf16.mxu1 %v4661_v6  ;;  %v4790_v6 = vld [vmem:[#allocation7 + $0x1cc] ss:$16 sps:$4 sm:$0xff]  }
 0x12a   : > { %1333 = vmatpush1.bf16.msra.mxu1 %v4659_v10  ;;  %v4796_v10 = vld [vmem:[#allocation7 + $0x1ec] ss:$16 sps:$4 sm:$0xff]  }
 0x12b   : > { %1334 = vmatprep.subr.bf16.mxu1 %v4664_v12  ;;  %v4802_v12 = vld [vmem:[#allocation7 + $0x20c] ss:$16 sps:$4 sm:$0xff]  }
 0x12e   : > { %1335 = vmatpush1.bf16.msra.mxu1 %v4662_v14  ;;  %v5718_v14 = vshrl.u32 %v545_v13, 7  ;;  %v4860_v13 = vld [vmem:[#allocation7 + $0x348] ss:$16 sps:$4 sm:$0xff]  }
 0x12f   : > { %1336 = vmatprep.subr.bf16.mxu1 %v4667_v15 }
 0x130   : > { %v5721_v15 = vsub.s32 0, %v5718_v14 }
 0x132   : > { %1337 = vmatpush1.bf16.msra.mxu1 %v4665_v7  ;;  %v5726_v7 = vld [vmem:[%s5833_s2] sm:$0xf] }
 0x133   : > { %1338 = vmatprep.subr.bf16.mxu1 %v4670_v16  ;;  %v5729_v16 = vsub.s32 1, %v5718_v14 }
 0x136   : > { %1339 = vmatpush1.bf16.msra.mxu1 %v4668_v52  ;;  %v548_v52 = vrot.slane %v5726_v7, %v5721_v15 }
 0x137   : > { %1340 = vmatprep.subr.bf16.mxu1 %v4673_v17  ;;  %v552_v17 = vrot.slane %v5726_v7, %v5729_v16 }
 0x13a   : > { %1341 = vmatpush1.bf16.msra.mxu1 %v4671_v18 }
 0x13b   : > { %1342 = vmatprep.subr.bf16.mxu1 %v4676_v20 }
 0x13e   : > { %1343 = vmatpush1.bf16.msra.mxu1 %v4674_v22 }
 0x13f   : > { %1344 = vmatprep.subr.bf16.mxu1 %v4679_v24 }
 0x142   : > { %1345 = vmatpush1.bf16.msra.mxu1 %v4677_v26 }
 0x143   : > { %1346 = vmatprep.subr.bf16.mxu1 %v4682_v27 }
 0x146   : > { %1347 = vmatpush1.bf16.msra.mxu1 %v4680_v29 }
 0x147   : > { %1348 = vmatprep.subr.bf16.mxu1 %v4685_v30 }
 0x14a   : > { %1349 = vmatpush1.bf16.msra.mxu1 %v4683_v31 }
 0x14b   : > { %1350 = vmatprep.subr.bf16.mxu1 %v4688_v32 }
 0x14e   : > { %1351 = vmatpush1.bf16.msra.mxu1 %v4686_v33 }
 0x14f   : > { %1352 = vmatprep.subr.bf16.mxu1 %v4691_v34  ;;  %v4797_v34 = vld [vmem:[#allocation7 + $0x200] ss:$16 sps:$4 sm:$0xff]  }
 0x152   : > { %1353 = vmatpush1.bf16.msra.mxu1 %v4689_v35  ;;  %v4800_v35 = vld [vmem:[#allocation7 + $0x208] ss:$16 sps:$4 sm:$0xff]  }
 0x153   : > { %1354 = vmatprep.subr.bf16.mxu1 %v4694_v36  ;;  %v4805_v36 = vld [vmem:[#allocation7 + $0x224] ss:$16 sps:$4 sm:$0xff]  }
 0x156   : > { %1355 = vmatpush1.bf16.msra.mxu1 %v4692_v37  ;;  %v4808_v37 = vld [vmem:[#allocation7 + $0x22c] ss:$16 sps:$4 sm:$0xff]  }
 0x157   : > { %1356 = vmatprep.subr.bf16.mxu1 %v4697_v38  ;;  %v4803_v38 = vld [vmem:[#allocation7 + $0x220] ss:$16 sps:$4 sm:$0xff]  }
 0x15a   : > { %1357 = vmatpush1.bf16.msra.mxu1 %v4695_v39  ;;  %v4806_v39 = vld [vmem:[#allocation7 + $0x228] ss:$16 sps:$4 sm:$0xff]  }
 0x15b   : > { %1358 = vmatprep.subr.bf16.mxu1 %v4700_v40  ;;  %v4811_v40 = vld [vmem:[#allocation7 + $0x244] ss:$16 sps:$4 sm:$0xff]  }
 0x15e   : > { %1359 = vmatpush1.bf16.msra.mxu1 %v4698_v41  ;;  %v4814_v41 = vld [vmem:[#allocation7 + $0x24c] ss:$16 sps:$4 sm:$0xff]  }
 0x15f   : > { %2249 = vmatprep.subr.bf16.mxu1 %v4706_v42  ;;  %v4809_v42 = vld [vmem:[#allocation7 + $0x240] ss:$16 sps:$4 sm:$0xff]  }
 0x161   : > { %1361 = vmatmul.mubr.bf16.vlgmr.msra.gmra.mrb[4].mxu1 %v5711_v9  ;;  %v4740_v9 = vld [vmem:[#allocation7 + $0xc8] ss:$16 sps:$4 sm:$0xff]  }
 0x162   : > { %2250 = vmatpush1.bf16.msra.mxu1 %v4704_v43  ;;  %v4812_v43 = vld [vmem:[#allocation7 + $0x248] ss:$16 sps:$4 sm:$0xff]  }
 0x163   : > { %2251 = vmatprep.subr.bf16.mxu1 %v4712_v44  ;;  %v4817_v44 = vld [vmem:[#allocation7 + $0x264] ss:$16 sps:$4 sm:$0xff]  }
 0x166   : > { %2252 = vmatpush1.bf16.msra.mxu1 %v4710_v45  ;;  %v4820_v45 = vld [vmem:[#allocation7 + $0x26c] ss:$16 sps:$4 sm:$0xff]  }
 0x167   : > { %2253 = vmatprep.subr.bf16.mxu1 %v4718_v46  ;;  %v4815_v46 = vld [vmem:[#allocation7 + $0x260] ss:$16 sps:$4 sm:$0xff]  }
 0x16a   : > { %2254 = vmatpush1.bf16.msra.mxu1 %v4716_v47  ;;  %v4818_v47 = vld [vmem:[#allocation7 + $0x268] ss:$16 sps:$4 sm:$0xff]  }
 0x16b   : > { %2255 = vmatprep.subr.bf16.mxu1 %v4724_v48  ;;  %v4823_v48 = vld [vmem:[#allocation7 + $0x284] ss:$16 sps:$4 sm:$0xff]  }
 0x16e   : > { %2256 = vmatpush1.bf16.msra.mxu1 %v4722_v49  ;;  %v4826_v49 = vld [vmem:[#allocation7 + $0x28c] ss:$16 sps:$4 sm:$0xff]  }
 0x16f   : > { %2257 = vmatprep.subr.bf16.mxu1 %v4730_v50  ;;  %v4821_v50 = vld [vmem:[#allocation7 + $0x280] ss:$16 sps:$4 sm:$0xff]  }
 0x172   : > { %2258 = vmatpush1.bf16.msra.mxu1 %v4728_v51  ;;  %v4824_v51 = vld [vmem:[#allocation7 + $0x288] ss:$16 sps:$4 sm:$0xff]  }
 0x173   : > { %2259 = vmatprep.subr.bf16.mxu1 %v4736_v53  ;;  %v4829_v53 = vld [vmem:[#allocation7 + $0x2a4] ss:$16 sps:$4 sm:$0xff]  }
 0x176   : > { %2260 = vmatpush1.bf16.msra.mxu1 %v4734_v54  ;;  %v4832_v54 = vld [vmem:[#allocation7 + $0x2ac] ss:$16 sps:$4 sm:$0xff]  }
 0x177   : > { %2261 = vmatprep.subr.bf16.mxu1 %v4742_v55  ;;  %v4827_v55 = vld [vmem:[#allocation7 + $0x2a0] ss:$16 sps:$4 sm:$0xff]  }
 0x17a   : > { %2262 = vmatpush1.bf16.msra.mxu1 %v4740_v9  ;;  %v4830_v9 = vld [vmem:[#allocation7 + $0x2a8] ss:$16 sps:$4 sm:$0xff]  }
 0x17b   : > { %2263 = vmatprep.subr.bf16.mxu1 %v4748_v56  ;;  %v4835_v56 = vld [vmem:[#allocation7 + $0x2c4] ss:$16 sps:$4 sm:$0xff]  }
 0x17e   : > { %2264 = vmatpush1.bf16.msra.mxu1 %v4746_v57  ;;  %v4838_v57 = vld [vmem:[#allocation7 + $0x2cc] ss:$16 sps:$4 sm:$0xff]  }
 0x17f   : > { %2265 = vmatprep.subr.bf16.mxu1 %v4754_v58  ;;  %v4833_v58 = vld [vmem:[#allocation7 + $0x2c0] ss:$16 sps:$4 sm:$0xff]  }
 0x182   : > { %2266 = vmatpush1.bf16.msra.mxu1 %v4752_v59  ;;  %v4836_v59 = vld [vmem:[#allocation7 + $0x2c8] ss:$16 sps:$4 sm:$0xff]  }
 0x183   : > { %2267 = vmatprep.subr.bf16.mxu1 %v4760_v60  ;;  %v4841_v60 = vld [vmem:[#allocation7 + $0x2e4] ss:$16 sps:$4 sm:$0xff]  }
 0x186   : > { %2268 = vmatpush1.bf16.msra.mxu1 %v4758_v61  ;;  %v4844_v61 = vld [vmem:[#allocation7 + $0x2ec] ss:$16 sps:$4 sm:$0xff]  }
 0x187   : > { %2269 = vmatprep.subr.bf16.mxu1 %v4766_v62  ;;  %v4839_v62 = vld [vmem:[#allocation7 + $0x2e0] ss:$16 sps:$4 sm:$0xff]  }
 0x18a   : > { %2270 = vmatpush1.bf16.msra.mxu1 %v4764_v63  ;;  %v4842_v63 = vld [vmem:[#allocation7 + $0x2e8] ss:$16 sps:$4 sm:$0xff]  }
 0x18b   : > { %2271 = vmatprep.subr.bf16.mxu1 %v4772_v0  ;;  %v4847_v0 = vld [vmem:[#allocation7 + $0x304] ss:$16 sps:$4 sm:$0xff]  }
 0x18e   : > { %2272 = vmatpush1.bf16.msra.mxu1 %v4770_v1  ;;  %v4850_v1 = vld [vmem:[#allocation7 + $0x30c] ss:$16 sps:$4 sm:$0xff]  }
 0x18f   : > { %2273 = vmatprep.subr.bf16.mxu1 %v4778_v2  ;;  %v4845_v2 = vld [vmem:[#allocation7 + $0x300] ss:$16 sps:$4 sm:$0xff]  }
 0x192   : > { %2274 = vmatpush1.bf16.msra.mxu1 %v4776_v3  ;;  %v4848_v3 = vld [vmem:[#allocation7 + $0x308] ss:$16 sps:$4 sm:$0xff]  }
 0x193   : > { %2275 = vmatprep.subr.bf16.mxu1 %v4784_v4  ;;  %v4853_v4 = vld [vmem:[#allocation7 + $0x324] ss:$16 sps:$4 sm:$0xff]  }
 0x196   : > { %2276 = vmatpush1.bf16.msra.mxu1 %v4782_v5  ;;  %v4856_v5 = vld [vmem:[#allocation7 + $0x32c] ss:$16 sps:$4 sm:$0xff]  }
 0x197   : > { %2277 = vmatprep.subr.bf16.mxu1 %v4790_v6  ;;  %v4851_v6 = vld [vmem:[#allocation7 + $0x320] ss:$16 sps:$4 sm:$0xff]  }
 0x19a   : > { %2278 = vmatpush1.bf16.msra.mxu1 %v4788_v8  ;;  %v4854_v8 = vld [vmem:[#allocation7 + $0x328] ss:$16 sps:$4 sm:$0xff]  }
 0x19b   : > { %2279 = vmatprep.subr.bf16.mxu1 %v4796_v10  ;;  %v4859_v10 = vld [vmem:[#allocation7 + $0x344] ss:$16 sps:$4 sm:$0xff]  }
 0x19e   : > { %2280 = vmatpush1.bf16.msra.mxu1 %v4794_v11  ;;  %v4862_v11 = vld [vmem:[#allocation7 + $0x34c] ss:$16 sps:$4 sm:$0xff]  }
 0x19f   : > { %2290 = vmatprep.subr.bf16.mxu1 %v4802_v12  ;;  %v4857_v12 = vld [vmem:[#allocation7 + $0x340] ss:$16 sps:$4 sm:$0xff]  }
 0x1b4   : > { %v1239_v18 = vpop.f32.mrb[0].mxu1 }
 0x1b5   : > { %v1240_v19 = vadd.f32 %v1239_v18, %v548_v52  ;;  %v1241_v20 = vpop.f32.mrb[1].mxu1  ;;  %v4865_v52 = vld [vmem:[#allocation7 + $0x364] ss:$16 sps:$4 sm:$0xff]   ;;  %v4863_v18 = vld [vmem:[#allocation7 + $0x360] ss:$16 sps:$4 sm:$0xff]  }
 0x1b6   : > { %v1242_v21 = vadd.f32 %v1241_v20, %v552_v17  ;;  %v1243_v22 = vpop.f32.mrb[2].mxu1  ;;  %v1280_v23 = vpop.f32.mrb[0].mxu0  ;;  %v4868_v17 = vld [vmem:[#allocation7 + $0x36c] ss:$16 sps:$4 sm:$0xff]   ;;  %v4871_v20 = vld [vmem:[#allocation7 + $0x384] ss:$16 sps:$4 sm:$0xff]  }
 0x1b7   : > { %v1281_v24 = vadd.f32 %v1280_v23, %v1240_v19  ;;  %v1244_v25 = vpop.f32.mrb[3].mxu1  ;;  %v1282_v26 = vpop.f32.mrb[1].mxu0  ;;  %v4866_v19 = vld [vmem:[#allocation7 + $0x368] ss:$16 sps:$4 sm:$0xff]   ;;  %v4869_v22 = vld [vmem:[#allocation7 + $0x380] ss:$16 sps:$4 sm:$0xff]  }
 0x1b8   : > { %v1283_v27 = vadd.f32 %v1282_v26, %v1242_v21  ;;  %v1284_v28 = vpop.f32.mrb[2].mxu0  ;;  %v4874_v21 = vld [vmem:[#allocation7 + $0x38c] ss:$16 sps:$4 sm:$0xff]   ;;  %v4872_v23 = vld [vmem:[#allocation7 + $0x388] ss:$16 sps:$4 sm:$0xff]  }
 0x1b9   : > { %v1369_v29 = vmax.f32 %v1281_v24, 0.0  ;;  %v1285_v30 = vpop.f32.mrb[3].mxu0  ;;  %v4877_v24 = vld [vmem:[#allocation7 + $0x3a4] ss:$16 sps:$4 sm:$0xff]   ;;  %v4880_v25 = vld [vmem:[#allocation7 + $0x3ac] ss:$16 sps:$4 sm:$0xff]  }
 0x1ba   : > { %v1370_v31 = vmax.f32 %v1283_v27, 0.0  ;;  %v4875_v26 = vld [vmem:[#allocation7 + $0x3a0] ss:$16 sps:$4 sm:$0xff]   ;;  %v4878_v27 = vld [vmem:[#allocation7 + $0x3a8] ss:$16 sps:$4 sm:$0xff]  }
 0x1bb   : > { %v1373_v32 = vpack.c.bf16 %v1369_v29, %v1369_v29  ;;  %v4883_v28 = vld [vmem:[#allocation7 + $0x3c4] ss:$16 sps:$4 sm:$0xff]   ;;  %v4886_v29 = vld [vmem:[#allocation7 + $0x3cc] ss:$16 sps:$4 sm:$0xff]   ;;  %v4881_v30 = vld [vmem:[#allocation7 + $0x3c0] ss:$16 sps:$4 sm:$0xff]  }
 0x1bc   : > { %v1374_v33 = vpack.c.bf16 %v1370_v31, %v1370_v31  ;;  %v4884_v31 = vld [vmem:[#allocation7 + $0x3c8] ss:$16 sps:$4 sm:$0xff]  }
 0x1be   : > { %2199 = vmatprep.mubr.bf16.mxu0 %v1374_v33  ;;  %2281 = vmatprep.mubr.bf16.mxu1 %v1374_v33  ;;  %v4892_v33 = vld [vmem:[#allocation7 + $0x3ec] ss:$16 sps:$4 sm:$0xff]  }
 0x1bf   : > { %2200 = vmatmul.mubr.bf16.vlgmr.msra.gmra.mrb[4].mxu0 %v1373_v32  ;;  %2282 = vmatmul.mubr.bf16.vlgmr.msra.gmra.mrb[8].mxu1 %v1373_v32  ;;  %v4889_v32 = vld [vmem:[#allocation7 + $0x3e4] ss:$16 sps:$4 sm:$0xff]  }
 0x1c0   : > { %2209 = vmatpush1.bf16.msra.mxu0 %v4797_v34  ;;  %2291 = vmatpush1.bf16.msra.mxu1 %v4800_v35  ;;  %v4887_v34 = vld [vmem:[#allocation7 + $0x3e0] ss:$16 sps:$4 sm:$0xff]   ;;  %v4890_v35 = vld [vmem:[#allocation7 + $0x3e8] ss:$16 sps:$4 sm:$0xff]  }
 0x1c1   : > { %2210 = vmatprep.subr.bf16.mxu0 %v4805_v36  ;;  %2292 = vmatprep.subr.bf16.mxu1 %v4808_v37  ;;  %v4895_v36 = vld [vmem:[#allocation8 + $0x4] ss:$16 sps:$4 sm:$0xff]   ;;  %v4898_v37 = vld [vmem:[#allocation8 + $0xc] ss:$16 sps:$4 sm:$0xff]  }
 0x1c4   : > { %2211 = vmatpush1.bf16.msra.mxu0 %v4803_v38  ;;  %2293 = vmatpush1.bf16.msra.mxu1 %v4806_v39  ;;  %v5736_v38 = vsub.s32 2, %v5718_v14  ;;  %v5739_v39 = vsub.s32 3, %v5718_v14  ;;  %v4901_v14 = vld [vmem:[#allocation8 + $0x24] ss:$16 sps:$4 sm:$0xff]  }
 0x1c5   : > { %2212 = vmatprep.subr.bf16.mxu0 %v4811_v40  ;;  %2294 = vmatprep.subr.bf16.mxu1 %v4814_v41 }
 0x1c6   : > { %v556_v40 = vrot.slane %v5726_v7, %v5736_v38  ;;  %v560_v41 = vrot.slane %v5726_v7, %v5739_v39  ;;  %v4899_v7 = vld [vmem:[#allocation8 + $0x20] ss:$16 sps:$4 sm:$0xff]  }
 0x1c8   : > { %2213 = vmatpush1.bf16.msra.mxu0 %v4809_v42  ;;  %2295 = vmatpush1.bf16.msra.mxu1 %v4812_v43 }
 0x1c9   : > { %2214 = vmatprep.subr.bf16.mxu0 %v4817_v44  ;;  %2296 = vmatprep.subr.bf16.mxu1 %v4820_v45 }
 0x1cc   : > { %2215 = vmatpush1.bf16.msra.mxu0 %v4815_v46  ;;  %2297 = vmatpush1.bf16.msra.mxu1 %v4818_v47 }
 0x1cd   : > { %2216 = vmatprep.subr.bf16.mxu0 %v4823_v48  ;;  %2298 = vmatprep.subr.bf16.mxu1 %v4826_v49 }
 0x1d0   : > { %2217 = vmatpush1.bf16.msra.mxu0 %v4821_v50  ;;  %2299 = vmatpush1.bf16.msra.mxu1 %v4824_v51  ;;  %v4893_v51 = vld [vmem:[#allocation8] ss:$16 sps:$4 sm:$0xff]  }
 0x1d1   : > { %2218 = vmatprep.subr.bf16.mxu0 %v4829_v53  ;;  %2300 = vmatprep.subr.bf16.mxu1 %v4832_v54  ;;  %v4896_v53 = vld [vmem:[#allocation8 + $0x8] ss:$16 sps:$4 sm:$0xff]  }
 0x1d4   : > { %2219 = vmatpush1.bf16.msra.mxu0 %v4827_v55  ;;  %2301 = vmatpush1.bf16.msra.mxu1 %v4830_v9  ;;  %v4904_v55 = vld [vmem:[#allocation8 + $0x2c] ss:$16 sps:$4 sm:$0xff]   ;;  %v4902_v9 = vld [vmem:[#allocation8 + $0x28] ss:$16 sps:$4 sm:$0xff]  }
 0x1d5   : > { %2220 = vmatprep.subr.bf16.mxu0 %v4835_v56  ;;  %2302 = vmatprep.subr.bf16.mxu1 %v4838_v57  ;;  %v4907_v56 = vld [vmem:[#allocation8 + $0x44] ss:$16 sps:$4 sm:$0xff]   ;;  %v4910_v57 = vld [vmem:[#allocation8 + $0x4c] ss:$16 sps:$4 sm:$0xff]  }
 0x1d8   : > { %2221 = vmatpush1.bf16.msra.mxu0 %v4833_v58  ;;  %2303 = vmatpush1.bf16.msra.mxu1 %v4836_v59  ;;  %v4905_v58 = vld [vmem:[#allocation8 + $0x40] ss:$16 sps:$4 sm:$0xff]   ;;  %v4908_v59 = vld [vmem:[#allocation8 + $0x48] ss:$16 sps:$4 sm:$0xff]  }
 0x1d9   : > { %2222 = vmatprep.subr.bf16.mxu0 %v4841_v60  ;;  %2304 = vmatprep.subr.bf16.mxu1 %v4844_v61  ;;  %v4913_v60 = vld [vmem:[#allocation8 + $0x64] ss:$16 sps:$4 sm:$0xff]   ;;  %v4916_v61 = vld [vmem:[#allocation8 + $0x6c] ss:$16 sps:$4 sm:$0xff]  }
 0x1dc   : > { %2223 = vmatpush1.bf16.msra.mxu0 %v4839_v62  ;;  %2305 = vmatpush1.bf16.msra.mxu1 %v4842_v63  ;;  %v4911_v62 = vld [vmem:[#allocation8 + $0x60] ss:$16 sps:$4 sm:$0xff]   ;;  %v4914_v63 = vld [vmem:[#allocation8 + $0x68] ss:$16 sps:$4 sm:$0xff]  }
 0x1dd   : > { %2224 = vmatprep.subr.bf16.mxu0 %v4847_v0  ;;  %2306 = vmatprep.subr.bf16.mxu1 %v4850_v1  ;;  %v4919_v0 = vld [vmem:[#allocation8 + $0x84] ss:$16 sps:$4 sm:$0xff]   ;;  %v4922_v1 = vld [vmem:[#allocation8 + $0x8c] ss:$16 sps:$4 sm:$0xff]  }
 0x1e0   : > { %2225 = vmatpush1.bf16.msra.mxu0 %v4845_v2  ;;  %2307 = vmatpush1.bf16.msra.mxu1 %v4848_v3  ;;  %v4917_v2 = vld [vmem:[#allocation8 + $0x80] ss:$16 sps:$4 sm:$0xff]   ;;  %v4920_v3 = vld [vmem:[#allocation8 + $0x88] ss:$16 sps:$4 sm:$0xff]  }
 0x1e1   : > { %2226 = vmatprep.subr.bf16.mxu0 %v4853_v4  ;;  %2308 = vmatprep.subr.bf16.mxu1 %v4856_v5  ;;  %v4925_v4 = vld [vmem:[#allocation8 + $0xa4] ss:$16 sps:$4 sm:$0xff]   ;;  %v4928_v5 = vld [vmem:[#allocation8 + $0xac] ss:$16 sps:$4 sm:$0xff]  }
 0x1e4   : > { %2227 = vmatpush1.bf16.msra.mxu0 %v4851_v6  ;;  %2309 = vmatpush1.bf16.msra.mxu1 %v4854_v8  ;;  %v4923_v6 = vld [vmem:[#allocation8 + $0xa0] ss:$16 sps:$4 sm:$0xff]   ;;  %v4926_v8 = vld [vmem:[#allocation8 + $0xa8] ss:$16 sps:$4 sm:$0xff]  }
 0x1e5   : > { %2228 = vmatprep.subr.bf16.mxu0 %v4859_v10  ;;  %2310 = vmatprep.subr.bf16.mxu1 %v4862_v11  ;;  %v4931_v10 = vld [vmem:[#allocation8 + $0xc4] ss:$16 sps:$4 sm:$0xff]   ;;  %v4934_v11 = vld [vmem:[#allocation8 + $0xcc] ss:$16 sps:$4 sm:$0xff]  }
 0x1e8   : > { %2229 = vmatpush1.bf16.msra.mxu0 %v4857_v12  ;;  %2311 = vmatpush1.bf16.msra.mxu1 %v4860_v13  ;;  %v4929_v12 = vld [vmem:[#allocation8 + $0xc0] ss:$16 sps:$4 sm:$0xff]   ;;  %v4932_v13 = vld [vmem:[#allocation8 + $0xc8] ss:$16 sps:$4 sm:$0xff]  }
 0x1e9   : > { %2230 = vmatprep.subr.bf16.mxu0 %v4865_v52  ;;  %2312 = vmatprep.subr.bf16.mxu1 %v4868_v17  ;;  %v4937_v52 = vld [vmem:[#allocation8 + $0xe4] ss:$16 sps:$4 sm:$0xff]   ;;  %v4940_v17 = vld [vmem:[#allocation8 + $0xec] ss:$16 sps:$4 sm:$0xff]  }
 0x1ec   : > { %2231 = vmatpush1.bf16.msra.mxu0 %v4863_v18  ;;  %2313 = vmatpush1.bf16.msra.mxu1 %v4866_v19  ;;  %v4935_v18 = vld [vmem:[#allocation8 + $0xe0] ss:$16 sps:$4 sm:$0xff]   ;;  %v4938_v19 = vld [vmem:[#allocation8 + $0xe8] ss:$16 sps:$4 sm:$0xff]  }
 0x1ed   : > { %2232 = vmatprep.subr.bf16.mxu0 %v4871_v20  ;;  %2314 = vmatprep.subr.bf16.mxu1 %v4874_v21  ;;  %v4943_v20 = vld [vmem:[#allocation8 + $0x104] ss:$16 sps:$4 sm:$0xff]   ;;  %v4946_v21 = vld [vmem:[#allocation8 + $0x10c] ss:$16 sps:$4 sm:$0xff]  }
 0x1f0   : > { %2233 = vmatpush1.bf16.msra.mxu0 %v4869_v22  ;;  %2315 = vmatpush1.bf16.msra.mxu1 %v4872_v23  ;;  %v4941_v22 = vld [vmem:[#allocation8 + $0x100] ss:$16 sps:$4 sm:$0xff]   ;;  %v4944_v23 = vld [vmem:[#allocation8 + $0x108] ss:$16 sps:$4 sm:$0xff]  }
 0x1f1   : > { %2234 = vmatprep.subr.bf16.mxu0 %v4877_v24  ;;  %2316 = vmatprep.subr.bf16.mxu1 %v4880_v25  ;;  %v4949_v24 = vld [vmem:[#allocation8 + $0x124] ss:$16 sps:$4 sm:$0xff]   ;;  %v4952_v25 = vld [vmem:[#allocation8 + $0x12c] ss:$16 sps:$4 sm:$0xff]  }
 0x1f4   : > { %2235 = vmatpush1.bf16.msra.mxu0 %v4875_v26  ;;  %2317 = vmatpush1.bf16.msra.mxu1 %v4878_v27  ;;  %v4947_v26 = vld [vmem:[#allocation8 + $0x120] ss:$16 sps:$4 sm:$0xff]   ;;  %v4950_v27 = vld [vmem:[#allocation8 + $0x128] ss:$16 sps:$4 sm:$0xff]  }
 0x1f5   : > { %2236 = vmatprep.subr.bf16.mxu0 %v4883_v28  ;;  %2318 = vmatprep.subr.bf16.mxu1 %v4886_v29  ;;  %v4955_v28 = vld [vmem:[#allocation8 + $0x144] ss:$16 sps:$4 sm:$0xff]   ;;  %v4958_v29 = vld [vmem:[#allocation8 + $0x14c] ss:$16 sps:$4 sm:$0xff]  }
 0x1f8   : > { %2237 = vmatpush1.bf16.msra.mxu0 %v4881_v30  ;;  %2319 = vmatpush1.bf16.msra.mxu1 %v4884_v31  ;;  %v4953_v30 = vld [vmem:[#allocation8 + $0x140] ss:$16 sps:$4 sm:$0xff]   ;;  %v4956_v31 = vld [vmem:[#allocation8 + $0x148] ss:$16 sps:$4 sm:$0xff]  }
 0x1f9   : > { %2238 = vmatprep.subr.bf16.mxu0 %v4889_v32  ;;  %2320 = vmatprep.subr.bf16.mxu1 %v4892_v33  ;;  %v4961_v32 = vld [vmem:[#allocation8 + $0x164] ss:$16 sps:$4 sm:$0xff]   ;;  %v4964_v33 = vld [vmem:[#allocation8 + $0x16c] ss:$16 sps:$4 sm:$0xff]  }
 0x1fc   : > { %2239 = vmatpush1.bf16.msra.mxu0 %v4887_v34  ;;  %2321 = vmatpush1.bf16.msra.mxu1 %v4890_v35  ;;  %v4959_v34 = vld [vmem:[#allocation8 + $0x160] ss:$16 sps:$4 sm:$0xff]   ;;  %v4962_v35 = vld [vmem:[#allocation8 + $0x168] ss:$16 sps:$4 sm:$0xff]  }
 0x1fd   : > { %3129 = vmatprep.subr.bf16.mxu0 %v4895_v36  ;;  %3211 = vmatprep.subr.bf16.mxu1 %v4898_v37  ;;  %v4967_v36 = vld [vmem:[#allocation8 + $0x184] ss:$16 sps:$4 sm:$0xff]   ;;  %v4970_v37 = vld [vmem:[#allocation8 + $0x18c] ss:$16 sps:$4 sm:$0xff]  }
 0x234   : > { %v1362_v42 = vpop.f32.mrb[4].mxu1 }
 0x235   : > { %v4382_v43 = vadd.f32 %v1362_v42, %v556_v40  ;;  %v1364_v44 = vpop.f32.mrb[5].mxu1  ;;  %v4965_v40 = vld [vmem:[#allocation8 + $0x180] ss:$16 sps:$4 sm:$0xff]   ;;  %v4973_v42 = vld [vmem:[#allocation8 + $0x1a4] ss:$16 sps:$4 sm:$0xff]  }
 0x236   : > { %v4383_v45 = vadd.f32 %v1364_v44, %v560_v41  ;;  %v1366_v46 = vpop.f32.mrb[6].mxu1  ;;  %v4968_v41 = vld [vmem:[#allocation8 + $0x188] ss:$16 sps:$4 sm:$0xff]   ;;  %v4971_v44 = vld [vmem:[#allocation8 + $0x1a0] ss:$16 sps:$4 sm:$0xff]  }
 0x237   : > { %v1371_v47 = vmax.f32 %v4382_v43, 0.0  ;;  %v1367_v48 = vpop.f32.mrb[7].mxu1  ;;  %v4976_v43 = vld [vmem:[#allocation8 + $0x1ac] ss:$16 sps:$4 sm:$0xff]   ;;  %v4979_v46 = vld [vmem:[#allocation8 + $0x1c4] ss:$16 sps:$4 sm:$0xff]  }
 0x238   : > { %v1372_v49 = vmax.f32 %v4383_v45, 0.0  ;;  %v4974_v45 = vld [vmem:[#allocation8 + $0x1a8] ss:$16 sps:$4 sm:$0xff]   ;;  %v4977_v48 = vld [vmem:[#allocation8 + $0x1c0] ss:$16 sps:$4 sm:$0xff]  }
 0x239   : > { %v1375_v54 = vpack.c.bf16 %v1371_v47, %v1371_v47  ;;  %v4982_v47 = vld [vmem:[#allocation8 + $0x1cc] ss:$16 sps:$4 sm:$0xff]  }
 0x23a   : > { %v1376_v50 = vpack.c.bf16 %v1372_v49, %v1372_v49  ;;  %v4980_v49 = vld [vmem:[#allocation8 + $0x1c8] ss:$16 sps:$4 sm:$0xff]  }
 0x23c   : > { %2240 = vmatprep.mubr.bf16.mxu0 %v1376_v50  ;;  %2322 = vmatprep.mubr.bf16.mxu1 %v1376_v50  ;;  %v4985_v50 = vld [vmem:[#allocation8 + $0x1e4] ss:$16 sps:$4 sm:$0xff]  }
 0x23d   : > { %2241 = vmatmul.mubr.bf16.vlgmr.msra.gmra.mrb[4].mxu0 %v1375_v54  ;;  %2323 = vmatmul.mubr.bf16.vlgmr.msra.gmra.mrb[8].mxu1 %v1375_v54  ;;  %v4986_v54 = vld [vmem:[#allocation8 + $0x1e8] ss:$16 sps:$4 sm:$0xff]  }
 0x23e   : > { %3130 = vmatpush1.bf16.msra.mxu0 %v4893_v51  ;;  %3212 = vmatpush1.bf16.msra.mxu1 %v4896_v53  ;;  %v4988_v51 = vld [vmem:[#allocation8 + $0x1ec] ss:$16 sps:$4 sm:$0xff]   ;;  %v4983_v53 = vld [vmem:[#allocation8 + $0x1e0] ss:$16 sps:$4 sm:$0xff]  }
 0x23f   : > { %3131 = vmatprep.subr.bf16.mxu0 %v4901_v14  ;;  %3213 = vmatprep.subr.bf16.mxu1 %v4904_v55  ;;  %v4991_v14 = vld [vmem:[#allocation8 + $0x204] ss:$16 sps:$4 sm:$0xff]   ;;  %v4994_v55 = vld [vmem:[#allocation8 + $0x20c] ss:$16 sps:$4 sm:$0xff]  }
 0x242   : > { %3132 = vmatpush1.bf16.msra.mxu0 %v4899_v7  ;;  %3214 = vmatpush1.bf16.msra.mxu1 %v4902_v9  ;;  %v5748_v7 = vld [vmem:[%s5835_s4] sm:$0xf] }
 0x243   : > { %3133 = vmatprep.subr.bf16.mxu0 %v4907_v56  ;;  %3215 = vmatprep.subr.bf16.mxu1 %v4910_v57  ;;  %v1510_v9 = vrot.slane %v5748_v7, %v5721_v15  ;;  %v1514_v56 = vrot.slane %v5748_v7, %v5729_v16  ;;  %v1522_v57 = vrot.slane %v5748_v7, %v5739_v39 }
 0x246   : > { %3134 = vmatpush1.bf16.msra.mxu0 %v4905_v58  ;;  %3216 = vmatpush1.bf16.msra.mxu1 %v4908_v59 }
 0x247   : > { %3135 = vmatprep.subr.bf16.mxu0 %v4913_v60  ;;  %3217 = vmatprep.subr.bf16.mxu1 %v4916_v61 }
 0x24a   : > { %3136 = vmatpush1.bf16.msra.mxu0 %v4911_v62  ;;  %3218 = vmatpush1.bf16.msra.mxu1 %v4914_v63 }
 0x24b   : > { %3137 = vmatprep.subr.bf16.mxu0 %v4919_v0  ;;  %3219 = vmatprep.subr.bf16.mxu1 %v4922_v1 }
 0x24e   : > { %3138 = vmatpush1.bf16.msra.mxu0 %v4917_v2  ;;  %3220 = vmatpush1.bf16.msra.mxu1 %v4920_v3 }
 0x24f   : > { %3139 = vmatprep.subr.bf16.mxu0 %v4925_v4  ;;  %3221 = vmatprep.subr.bf16.mxu1 %v4928_v5 }
 0x252   : > { %3140 = vmatpush1.bf16.msra.mxu0 %v4923_v6  ;;  %3222 = vmatpush1.bf16.msra.mxu1 %v4926_v8 }
 0x253   : > { %3141 = vmatprep.subr.bf16.mxu0 %v4931_v10  ;;  %3223 = vmatprep.subr.bf16.mxu1 %v4934_v11  ;;  %v4989_v11 = vld [vmem:[#allocation8 + $0x200] ss:$16 sps:$4 sm:$0xff]  }
 0x256   : > { %3142 = vmatpush1.bf16.msra.mxu0 %v4929_v12  ;;  %3224 = vmatpush1.bf16.msra.mxu1 %v4932_v13  ;;  %v4992_v12 = vld [vmem:[#allocation8 + $0x208] ss:$16 sps:$4 sm:$0xff]  }
 0x257   : > { %3143 = vmatprep.subr.bf16.mxu0 %v4937_v52  ;;  %3225 = vmatprep.subr.bf16.mxu1 %v4940_v17  ;;  %v4997_v52 = vld [vmem:[#allocation8 + $0x224] ss:$16 sps:$4 sm:$0xff]   ;;  %v5000_v17 = vld [vmem:[#allocation8 + $0x22c] ss:$16 sps:$4 sm:$0xff]  }
 0x25a   : > { %3144 = vmatpush1.bf16.msra.mxu0 %v4935_v18  ;;  %3226 = vmatpush1.bf16.msra.mxu1 %v4938_v19  ;;  %v4995_v19 = vld [vmem:[#allocation8 + $0x220] ss:$16 sps:$4 sm:$0xff]  }
 0x25b   : > { %3145 = vmatprep.subr.bf16.mxu0 %v4943_v20  ;;  %3227 = vmatprep.subr.bf16.mxu1 %v4946_v21  ;;  %v4998_v20 = vld [vmem:[#allocation8 + $0x228] ss:$16 sps:$4 sm:$0xff]   ;;  %v5003_v21 = vld [vmem:[#allocation8 + $0x244] ss:$16 sps:$4 sm:$0xff]  }
 0x25e   : > { %3146 = vmatpush1.bf16.msra.mxu0 %v4941_v22  ;;  %3228 = vmatpush1.bf16.msra.mxu1 %v4944_v23  ;;  %v5006_v22 = vld [vmem:[#allocation8 + $0x24c] ss:$16 sps:$4 sm:$0xff]   ;;  %v5001_v23 = vld [vmem:[#allocation8 + $0x240] ss:$16 sps:$4 sm:$0xff]  }
 0x25f   : > { %3147 = vmatprep.subr.bf16.mxu0 %v4949_v24  ;;  %3229 = vmatprep.subr.bf16.mxu1 %v4952_v25  ;;  %v5004_v24 = vld [vmem:[#allocation8 + $0x248] ss:$16 sps:$4 sm:$0xff]   ;;  %v5009_v25 = vld [vmem:[#allocation8 + $0x264] ss:$16 sps:$4 sm:$0xff]  }
 0x262   : > { %3148 = vmatpush1.bf16.msra.mxu0 %v4947_v26  ;;  %3230 = vmatpush1.bf16.msra.mxu1 %v4950_v27  ;;  %v5012_v26 = vld [vmem:[#allocation8 + $0x26c] ss:$16 sps:$4 sm:$0xff]   ;;  %v5007_v27 = vld [vmem:[#allocation8 + $0x260] ss:$16 sps:$4 sm:$0xff]  }
 0x263   : > { %3149 = vmatprep.subr.bf16.mxu0 %v4955_v28  ;;  %3231 = vmatprep.subr.bf16.mxu1 %v4958_v29  ;;  %v5010_v28 = vld [vmem:[#allocation8 + $0x268] ss:$16 sps:$4 sm:$0xff]   ;;  %v5015_v29 = vld [vmem:[#allocation8 + $0x284] ss:$16 sps:$4 sm:$0xff]  }
 0x266   : > { %3150 = vmatpush1.bf16.msra.mxu0 %v4953_v30  ;;  %3232 = vmatpush1.bf16.msra.mxu1 %v4956_v31  ;;  %v5018_v30 = vld [vmem:[#allocation8 + $0x28c] ss:$16 sps:$4 sm:$0xff]   ;;  %v5013_v31 = vld [vmem:[#allocation8 + $0x280] ss:$16 sps:$4 sm:$0xff]  }
 0x267   : > { %3151 = vmatprep.subr.bf16.mxu0 %v4961_v32  ;;  %3233 = vmatprep.subr.bf16.mxu1 %v4964_v33  ;;  %v5016_v32 = vld [vmem:[#allocation8 + $0x288] ss:$16 sps:$4 sm:$0xff]   ;;  %v5021_v33 = vld [vmem:[#allocation8 + $0x2a4] ss:$16 sps:$4 sm:$0xff]  }
 0x26a   : > { %3152 = vmatpush1.bf16.msra.mxu0 %v4959_v34  ;;  %3234 = vmatpush1.bf16.msra.mxu1 %v4962_v35  ;;  %v5024_v34 = vld [vmem:[#allocation8 + $0x2ac] ss:$16 sps:$4 sm:$0xff]   ;;  %v5019_v35 = vld [vmem:[#allocation8 + $0x2a0] ss:$16 sps:$4 sm:$0xff]  }
 0x26b   : > { %3153 = vmatprep.subr.bf16.mxu0 %v4967_v36  ;;  %3235 = vmatprep.subr.bf16.mxu1 %v4970_v37  ;;  %v5022_v36 = vld [vmem:[#allocation8 + $0x2a8] ss:$16 sps:$4 sm:$0xff]   ;;  %v5027_v37 = vld [vmem:[#allocation8 + $0x2c4] ss:$16 sps:$4 sm:$0xff]  }
 0x26e   : > { %3154 = vmatpush1.bf16.msra.mxu0 %v4965_v40  ;;  %3236 = vmatpush1.bf16.msra.mxu1 %v4968_v41  ;;  %v5030_v40 = vld [vmem:[#allocation8 + $0x2cc] ss:$16 sps:$4 sm:$0xff]   ;;  %v5025_v41 = vld [vmem:[#allocation8 + $0x2c0] ss:$16 sps:$4 sm:$0xff]  }
 0x26f   : > { %3155 = vmatprep.subr.bf16.mxu0 %v4973_v42  ;;  %3237 = vmatprep.subr.bf16.mxu1 %v4976_v43  ;;  %v5028_v42 = vld [vmem:[#allocation8 + $0x2c8] ss:$16 sps:$4 sm:$0xff]   ;;  %v5033_v43 = vld [vmem:[#allocation8 + $0x2e4] ss:$16 sps:$4 sm:$0xff]  }
 0x272   : > { %3156 = vmatpush1.bf16.msra.mxu0 %v4971_v44  ;;  %3238 = vmatpush1.bf16.msra.mxu1 %v4974_v45  ;;  %v5036_v44 = vld [vmem:[#allocation8 + $0x2ec] ss:$16 sps:$4 sm:$0xff]   ;;  %v5031_v45 = vld [vmem:[#allocation8 + $0x2e0] ss:$16 sps:$4 sm:$0xff]  }
 0x273   : > { %3157 = vmatprep.subr.bf16.mxu0 %v4979_v46  ;;  %3239 = vmatprep.subr.bf16.mxu1 %v4982_v47  ;;  %v5034_v46 = vld [vmem:[#allocation8 + $0x2e8] ss:$16 sps:$4 sm:$0xff]   ;;  %v5039_v47 = vld [vmem:[#allocation8 + $0x304] ss:$16 sps:$4 sm:$0xff]  }
 0x276   : > { %3158 = vmatpush1.bf16.msra.mxu0 %v4977_v48  ;;  %3240 = vmatpush1.bf16.msra.mxu1 %v4980_v49  ;;  %v5042_v48 = vld [vmem:[#allocation8 + $0x30c] ss:$16 sps:$4 sm:$0xff]   ;;  %v5037_v49 = vld [vmem:[#allocation8 + $0x300] ss:$16 sps:$4 sm:$0xff]  }
 0x277   : > { %3159 = vmatprep.subr.bf16.mxu0 %v4985_v50  ;;  %3241 = vmatprep.subr.bf16.mxu1 %v4988_v51  ;;  %v5040_v50 = vld [vmem:[#allocation8 + $0x308] ss:$16 sps:$4 sm:$0xff]   ;;  %v5045_v51 = vld [vmem:[#allocation8 + $0x324] ss:$16 sps:$4 sm:$0xff]  }
 0x27a   : > { %3160 = vmatpush1.bf16.msra.mxu0 %v4983_v53  ;;  %3242 = vmatpush1.bf16.msra.mxu1 %v4986_v54  ;;  %v5048_v53 = vld [vmem:[#allocation8 + $0x32c] ss:$16 sps:$4 sm:$0xff]   ;;  %v5043_v54 = vld [vmem:[#allocation8 + $0x320] ss:$16 sps:$4 sm:$0xff]  }
 0x27b   : > { %3170 = vmatprep.subr.bf16.mxu0 %v4991_v14  ;;  %3252 = vmatprep.subr.bf16.mxu1 %v4994_v55  ;;  %v5046_v14 = vld [vmem:[#allocation8 + $0x328] ss:$16 sps:$4 sm:$0xff]   ;;  %v5051_v55 = vld [vmem:[#allocation8 + $0x344] ss:$16 sps:$4 sm:$0xff]  }
 0x310   : > { %v2242_v58 = vpop.f32.mrb[4].mxu0  ;;  %v5756_v59 = vpop.f32.mrb[8].mxu1 }
 0x311   : > { %v4384_v60 = vadd.f32 %v2242_v58, %v1510_v9  ;;  %v2244_v61 = vpop.f32.mrb[5].mxu0  ;;  %v2326_v62 = vpop.f32.mrb[9].mxu1  ;;  %v5054_v9 = vld [vmem:[#allocation8 + $0x34c] ss:$16 sps:$4 sm:$0xff]   ;;  %v5057_v58 = vld [vmem:[#allocation8 + $0x364] ss:$16 sps:$4 sm:$0xff]  }
 0x312   : > { %v4385_v63 = vadd.f32 %v2244_v61, %v1514_v56  ;;  %v4387_v0 = vadd.f32 %v2326_v62, %v1522_v57  ;;  %v2246_v1 = vpop.f32.mrb[6].mxu0  ;;  %v2328_v2 = vpop.f32.mrb[10].mxu1  ;;  %v5049_v56 = vld [vmem:[#allocation8 + $0x340] ss:$16 sps:$4 sm:$0xff]   ;;  %v5052_v57 = vld [vmem:[#allocation8 + $0x348] ss:$16 sps:$4 sm:$0xff]  }
 0x313   : > { %v2331_v3 = vmax.f32 %v4384_v60, 0.0  ;;  %v2247_v4 = vpop.f32.mrb[7].mxu0  ;;  %v2329_v5 = vpop.f32.mrb[11].mxu1  ;;  %v5060_v60 = vld [vmem:[#allocation8 + $0x36c] ss:$16 sps:$4 sm:$0xff]  }
 0x314   : > { %v2332_v6 = vmax.f32 %v4385_v63, 0.0  ;;  %v2334_v8 = vmax.f32 %v4387_v0, 0.0  ;;  %v5055_v61 = vld [vmem:[#allocation8 + $0x360] ss:$16 sps:$4 sm:$0xff]   ;;  %v5058_v62 = vld [vmem:[#allocation8 + $0x368] ss:$16 sps:$4 sm:$0xff]  }
 0x315   : > { %v2335_v13 = vpack.c.bf16 %v2331_v3, %v2331_v3  ;;  %v5063_v63 = vld [vmem:[#allocation8 + $0x384] ss:$16 sps:$4 sm:$0xff]   ;;  %v5066_v0 = vld [vmem:[#allocation8 + $0x38c] ss:$16 sps:$4 sm:$0xff]   ;;  %v5061_v1 = vld [vmem:[#allocation8 + $0x380] ss:$16 sps:$4 sm:$0xff]  }
 0x316   : > { %v2336_v10 = vpack.c.bf16 %v2332_v6, %v2332_v6  ;;  %v2338_v18 = vpack.c.bf16 %v2334_v8, %v2334_v8  ;;  %v5064_v2 = vld [vmem:[#allocation8 + $0x388] ss:$16 sps:$4 sm:$0xff]   ;;  %v5069_v3 = vld [vmem:[#allocation8 + $0x3a4] ss:$16 sps:$4 sm:$0xff]   ;;  %v5072_v4 = vld [vmem:[#allocation8 + $0x3ac] ss:$16 sps:$4 sm:$0xff]   ;;  %v1518_v8 = vrot.slane %v5748_v7, %v5736_v38 }
 0x317   : > { %v5067_v5 = vld [vmem:[#allocation8 + $0x3a0] ss:$16 sps:$4 sm:$0xff]   ;;  %v5070_v6 = vld [vmem:[#allocation8 + $0x3a8] ss:$16 sps:$4 sm:$0xff]   ;;  %v5087_v7 = vld [vmem:[#allocation10 + $0x4] ss:$8 sps:$4 sm:$0xff]  }
 0x318   : > { %3161 = vmatprep.mubr.bf16.mxu0 %v2336_v10  ;;  %3243 = vmatprep.mubr.bf16.mxu1 %v2336_v10  ;;  %v5075_v10 = vld [vmem:[#allocation8 + $0x3c4] ss:$16 sps:$4 sm:$0xff]  }
 0x319   : > { %3162 = vmatmul.mubr.bf16.vlgmr.msra.gmra.mrb[8].mxu0 %v2335_v13  ;;  %3244 = vmatmul.mubr.bf16.vlgmr.msra.gmra.mrb[12].mxu1 %v2335_v13  ;;  %v5076_v13 = vld [vmem:[#allocation8 + $0x3c8] ss:$16 sps:$4 sm:$0xff]  }
 0x31a   : > { %3171 = vmatpush1.bf16.msra.mxu0 %v4989_v11  ;;  %3253 = vmatpush1.bf16.msra.mxu1 %v4992_v12  ;;  %v5078_v11 = vld [vmem:[#allocation8 + $0x3cc] ss:$16 sps:$4 sm:$0xff]   ;;  %v5073_v12 = vld [vmem:[#allocation8 + $0x3c0] ss:$16 sps:$4 sm:$0xff]  }
 0x31b   : > { %3202 = vmatprep.mubr.bf16.mxu0 %v2338_v18  ;;  %3284 = vmatprep.mubr.bf16.mxu1 %v2338_v18  ;;  %v5084_v18 = vld [vmem:[#allocation8 + $0x3ec] ss:$16 sps:$4 sm:$0xff]  }
 0x31c   : > { %3172 = vmatprep.subr.bf16.mxu0 %v4997_v52  ;;  %3254 = vmatprep.subr.bf16.mxu1 %v5000_v17  ;;  %v4386_v52 = vadd.f32 %v5756_v59, %v1518_v8  ;;  %v5081_v17 = vld [vmem:[#allocation8 + $0x3e4] ss:$16 sps:$4 sm:$0xff]   ;;  %v5088_v59 = vld [vmem:[#allocation10 + $0x10] ss:$8 sps:$4 sm:$0xff]  }
 0x31e   : > { %3173 = vmatpush1.bf16.msra.mxu0 %v4995_v19  ;;  %3255 = vmatpush1.bf16.msra.mxu1 %v4998_v20  ;;  %v5079_v19 = vld [vmem:[#allocation8 + $0x3e0] ss:$16 sps:$4 sm:$0xff]   ;;  %v5082_v20 = vld [vmem:[#allocation8 + $0x3e8] ss:$16 sps:$4 sm:$0xff]  }
 0x31f   : > { %3174 = vmatprep.subr.bf16.mxu0 %v5003_v21  ;;  %3256 = vmatprep.subr.bf16.mxu1 %v5006_v22  ;;  %v2333_v21 = vmax.f32 %v4386_v52, 0.0  ;;  %v5085_v22 = vld [vmem:[#allocation10] ss:$8 sps:$4 sm:$0xff]  }
 0x322   : > { %3175 = vmatpush1.bf16.msra.mxu0 %v5001_v23  ;;  %3257 = vmatpush1.bf16.msra.mxu1 %v5004_v24  ;;  %v2337_v23 = vpack.c.bf16 %v2333_v21, %v2333_v21  ;;  %v5090_v24 = vld [vmem:[#allocation10 + $0x14] ss:$8 sps:$4 sm:$0xff]  }
 0x323   : > { %3176 = vmatprep.subr.bf16.mxu0 %v5009_v25  ;;  %3258 = vmatprep.subr.bf16.mxu1 %v5012_v26  ;;  %v5093_v25 = vld [vmem:[#allocation10 + $0x24] ss:$8 sps:$4 sm:$0xff]   ;;  %v5091_v26 = vld [vmem:[#allocation10 + $0x20] ss:$8 sps:$4 sm:$0xff]   ;;  %v5144_v21 = vld [vmem:[#allocation10 + $0x134] ss:$8 sps:$4 sm:$0xff]  }
 0x326   : > { %3177 = vmatpush1.bf16.msra.mxu0 %v5007_v27  ;;  %3259 = vmatpush1.bf16.msra.mxu1 %v5010_v28  ;;  %v5096_v27 = vld [vmem:[#allocation10 + $0x34] ss:$8 sps:$4 sm:$0xff]   ;;  %v5094_v28 = vld [vmem:[#allocation10 + $0x30] ss:$8 sps:$4 sm:$0xff]  }
 0x327   : > { %3178 = vmatprep.subr.bf16.mxu0 %v5015_v29  ;;  %3260 = vmatprep.subr.bf16.mxu1 %v5018_v30  ;;  %v5099_v29 = vld [vmem:[#allocation10 + $0x44] ss:$8 sps:$4 sm:$0xff]   ;;  %v5097_v30 = vld [vmem:[#allocation10 + $0x40] ss:$8 sps:$4 sm:$0xff]  }
 0x32a   : > { %3179 = vmatpush1.bf16.msra.mxu0 %v5013_v31  ;;  %3261 = vmatpush1.bf16.msra.mxu1 %v5016_v32  ;;  %v5102_v31 = vld [vmem:[#allocation10 + $0x54] ss:$8 sps:$4 sm:$0xff]   ;;  %v5100_v32 = vld [vmem:[#allocation10 + $0x50] ss:$8 sps:$4 sm:$0xff]  }
 0x32b   : > { %3180 = vmatprep.subr.bf16.mxu0 %v5021_v33  ;;  %3262 = vmatprep.subr.bf16.mxu1 %v5024_v34  ;;  %v5105_v33 = vld [vmem:[#allocation10 + $0x64] ss:$8 sps:$4 sm:$0xff]   ;;  %v5103_v34 = vld [vmem:[#allocation10 + $0x60] ss:$8 sps:$4 sm:$0xff]  }
 0x32e   : > { %3181 = vmatpush1.bf16.msra.mxu0 %v5019_v35  ;;  %3263 = vmatpush1.bf16.msra.mxu1 %v5022_v36  ;;  %v5108_v35 = vld [vmem:[#allocation10 + $0x74] ss:$8 sps:$4 sm:$0xff]   ;;  %v5106_v36 = vld [vmem:[#allocation10 + $0x70] ss:$8 sps:$4 sm:$0xff]  }
 0x32f   : > { %3182 = vmatprep.subr.bf16.mxu0 %v5027_v37  ;;  %3264 = vmatprep.subr.bf16.mxu1 %v5030_v40  ;;  %v5111_v37 = vld [vmem:[#allocation10 + $0x84] ss:$8 sps:$4 sm:$0xff]   ;;  %v5109_v40 = vld [vmem:[#allocation10 + $0x80] ss:$8 sps:$4 sm:$0xff]  }
 0x332   : > { %3183 = vmatpush1.bf16.msra.mxu0 %v5025_v41  ;;  %3265 = vmatpush1.bf16.msra.mxu1 %v5028_v42  ;;  %v5114_v41 = vld [vmem:[#allocation10 + $0x94] ss:$8 sps:$4 sm:$0xff]   ;;  %v5112_v42 = vld [vmem:[#allocation10 + $0x90] ss:$8 sps:$4 sm:$0xff]  }
 0x333   : > { %3184 = vmatprep.subr.bf16.mxu0 %v5033_v43  ;;  %3266 = vmatprep.subr.bf16.mxu1 %v5036_v44  ;;  %v5117_v43 = vld [vmem:[#allocation10 + $0xa4] ss:$8 sps:$4 sm:$0xff]   ;;  %v5115_v44 = vld [vmem:[#allocation10 + $0xa0] ss:$8 sps:$4 sm:$0xff]  }
 0x336   : > { %3185 = vmatpush1.bf16.msra.mxu0 %v5031_v45  ;;  %3267 = vmatpush1.bf16.msra.mxu1 %v5034_v46  ;;  %v5120_v45 = vld [vmem:[#allocation10 + $0xb4] ss:$8 sps:$4 sm:$0xff]   ;;  %v5118_v46 = vld [vmem:[#allocation10 + $0xb0] ss:$8 sps:$4 sm:$0xff]  }
 0x337   : > { %3186 = vmatprep.subr.bf16.mxu0 %v5039_v47  ;;  %3268 = vmatprep.subr.bf16.mxu1 %v5042_v48  ;;  %v5123_v47 = vld [vmem:[#allocation10 + $0xc4] ss:$8 sps:$4 sm:$0xff]   ;;  %v5121_v48 = vld [vmem:[#allocation10 + $0xc0] ss:$8 sps:$4 sm:$0xff]  }
 0x33a   : > { %3187 = vmatpush1.bf16.msra.mxu0 %v5037_v49  ;;  %3269 = vmatpush1.bf16.msra.mxu1 %v5040_v50  ;;  %v5126_v49 = vld [vmem:[#allocation10 + $0xd4] ss:$8 sps:$4 sm:$0xff]   ;;  %v5124_v50 = vld [vmem:[#allocation10 + $0xd0] ss:$8 sps:$4 sm:$0xff]  }
 0x33b   : > { %3188 = vmatprep.subr.bf16.mxu0 %v5045_v51  ;;  %3270 = vmatprep.subr.bf16.mxu1 %v5048_v53  ;;  %v5129_v51 = vld [vmem:[#allocation10 + $0xe4] ss:$8 sps:$4 sm:$0xff]   ;;  %v5127_v53 = vld [vmem:[#allocation10 + $0xe0] ss:$8 sps:$4 sm:$0xff]  }
 0x33e   : > { %3189 = vmatpush1.bf16.msra.mxu0 %v5043_v54  ;;  %3271 = vmatpush1.bf16.msra.mxu1 %v5046_v14  ;;  %v5132_v54 = vld [vmem:[#allocation10 + $0xf4] ss:$8 sps:$4 sm:$0xff]   ;;  %v5130_v14 = vld [vmem:[#allocation10 + $0xf0] ss:$8 sps:$4 sm:$0xff]  }
 0x33f   : > { %3190 = vmatprep.subr.bf16.mxu0 %v5051_v55  ;;  %3272 = vmatprep.subr.bf16.mxu1 %v5054_v9  ;;  %v5135_v55 = vld [vmem:[#allocation10 + $0x104] ss:$8 sps:$4 sm:$0xff]   ;;  %v5764_v9 = vld [vmem:[%s5837_s6] sm:$0xf] }
 0x342   : > { %3191 = vmatpush1.bf16.msra.mxu0 %v5049_v56  ;;  %3273 = vmatpush1.bf16.msra.mxu1 %v5052_v57  ;;  %v2472_v56 = vrot.slane %v5764_v9, %v5721_v15  ;;  %v2476_v57 = vrot.slane %v5764_v9, %v5729_v16 }
 0x343   : > { %3192 = vmatprep.subr.bf16.mxu0 %v5057_v58  ;;  %3274 = vmatprep.subr.bf16.mxu1 %v5060_v60  ;;  %v2484_v58 = vrot.slane %v5764_v9, %v5739_v39 }
 0x346   : > { %3193 = vmatpush1.bf16.msra.mxu0 %v5055_v61  ;;  %3275 = vmatpush1.bf16.msra.mxu1 %v5058_v62 }
 0x347   : > { %3194 = vmatprep.subr.bf16.mxu0 %v5063_v63  ;;  %3276 = vmatprep.subr.bf16.mxu1 %v5066_v0 }
 0x34a   : > { %3195 = vmatpush1.bf16.msra.mxu0 %v5061_v1  ;;  %3277 = vmatpush1.bf16.msra.mxu1 %v5064_v2 }
 0x34b   : > { %3196 = vmatprep.subr.bf16.mxu0 %v5069_v3  ;;  %3278 = vmatprep.subr.bf16.mxu1 %v5072_v4 }
 0x34e   : > { %3197 = vmatpush1.bf16.msra.mxu0 %v5067_v5  ;;  %3279 = vmatpush1.bf16.msra.mxu1 %v5070_v6 }
 0x34f   : > { %3198 = vmatprep.subr.bf16.mxu0 %v5075_v10  ;;  %3280 = vmatprep.subr.bf16.mxu1 %v5078_v11 }
 0x352   : > { %3199 = vmatpush1.bf16.msra.mxu0 %v5073_v12  ;;  %3281 = vmatpush1.bf16.msra.mxu1 %v5076_v13  ;;  %v5133_v13 = vld [vmem:[#allocation10 + $0x100] ss:$8 sps:$4 sm:$0xff]  }
 0x353   : > { %3200 = vmatprep.subr.bf16.mxu0 %v5081_v17  ;;  %3282 = vmatprep.subr.bf16.mxu1 %v5084_v18  ;;  %v5138_v17 = vld [vmem:[#allocation10 + $0x114] ss:$8 sps:$4 sm:$0xff]   ;;  %v5136_v18 = vld [vmem:[#allocation10 + $0x110] ss:$8 sps:$4 sm:$0xff]  }
 0x356   : > { %3201 = vmatpush1.bf16.msra.mxu0 %v5079_v19  ;;  %3283 = vmatpush1.bf16.msra.mxu1 %v5082_v20  ;;  %v5141_v19 = vld [vmem:[#allocation10 + $0x124] ss:$8 sps:$4 sm:$0xff]   ;;  %v5139_v20 = vld [vmem:[#allocation10 + $0x120] ss:$8 sps:$4 sm:$0xff]  }
 0x357   : > { %3697 = vmatprep.subr.bf16.mxu0 %v5087_v7  ;;  %v5142_v7 = vld [vmem:[#allocation10 + $0x130] ss:$8 sps:$4 sm:$0xff]  }
 0x359   : > { %3203 = vmatmul.mubr.bf16.vlgmr.msra.gmra.mrb[8].mxu0 %v2337_v23  ;;  %3285 = vmatmul.mubr.bf16.vlgmr.msra.gmra.mrb[12].mxu1 %v2337_v23  ;;  %v5145_v23 = vld [vmem:[#allocation10 + $0x140] ss:$8 sps:$4 sm:$0xff]  }
 0x35a   : > { %3698 = vmatpush1.bf16.msra.mxu0 %v5085_v22  ;;  %v5147_v22 = vld [vmem:[#allocation10 + $0x144] ss:$8 sps:$4 sm:$0xff]  }
 0x35b   : > { %3699 = vmatprep.subr.bf16.mxu0 %v5090_v24  ;;  %v5150_v24 = vld [vmem:[#allocation10 + $0x154] ss:$8 sps:$4 sm:$0xff]  }
 0x35e   : > { %3700 = vmatpush1.bf16.msra.mxu0 %v5088_v59  ;;  %v5148_v59 = vld [vmem:[#allocation10 + $0x150] ss:$8 sps:$4 sm:$0xff]  }
 0x35f   : > { %3701 = vmatprep.subr.bf16.mxu0 %v5093_v25  ;;  %v5153_v25 = vld [vmem:[#allocation10 + $0x164] ss:$8 sps:$4 sm:$0xff]  }
 0x362   : > { %3702 = vmatpush1.bf16.msra.mxu0 %v5091_v26  ;;  %v5151_v26 = vld [vmem:[#allocation10 + $0x160] ss:$8 sps:$4 sm:$0xff]  }
 0x363   : > { %3703 = vmatprep.subr.bf16.mxu0 %v5096_v27  ;;  %v5156_v27 = vld [vmem:[#allocation10 + $0x174] ss:$8 sps:$4 sm:$0xff]  }
 0x366   : > { %3704 = vmatpush1.bf16.msra.mxu0 %v5094_v28  ;;  %v5154_v28 = vld [vmem:[#allocation10 + $0x170] ss:$8 sps:$4 sm:$0xff]  }
 0x367   : > { %3705 = vmatprep.subr.bf16.mxu0 %v5099_v29  ;;  %v5159_v29 = vld [vmem:[#allocation10 + $0x184] ss:$8 sps:$4 sm:$0xff]  }
 0x36a   : > { %3706 = vmatpush1.bf16.msra.mxu0 %v5097_v30  ;;  %v5157_v30 = vld [vmem:[#allocation10 + $0x180] ss:$8 sps:$4 sm:$0xff]  }
 0x36b   : > { %3707 = vmatprep.subr.bf16.mxu0 %v5102_v31  ;;  %v5162_v31 = vld [vmem:[#allocation10 + $0x194] ss:$8 sps:$4 sm:$0xff]  }
 0x36e   : > { %3708 = vmatpush1.bf16.msra.mxu0 %v5100_v32  ;;  %v5160_v32 = vld [vmem:[#allocation10 + $0x190] ss:$8 sps:$4 sm:$0xff]  }
 0x36f   : > { %3709 = vmatprep.subr.bf16.mxu0 %v5105_v33  ;;  %v5165_v33 = vld [vmem:[#allocation10 + $0x1a4] ss:$8 sps:$4 sm:$0xff]  }
 0x372   : > { %3710 = vmatpush1.bf16.msra.mxu0 %v5103_v34  ;;  %v5163_v34 = vld [vmem:[#allocation10 + $0x1a0] ss:$8 sps:$4 sm:$0xff]  }
 0x373   : > { %3711 = vmatprep.subr.bf16.mxu0 %v5108_v35  ;;  %v5168_v35 = vld [vmem:[#allocation10 + $0x1b4] ss:$8 sps:$4 sm:$0xff]  }
 0x376   : > { %3712 = vmatpush1.bf16.msra.mxu0 %v5106_v36  ;;  %v5166_v36 = vld [vmem:[#allocation10 + $0x1b0] ss:$8 sps:$4 sm:$0xff]  }
 0x377   : > { %3713 = vmatprep.subr.bf16.mxu0 %v5111_v37  ;;  %v5171_v37 = vld [vmem:[#allocation10 + $0x1c4] ss:$8 sps:$4 sm:$0xff]  }
 0x37a   : > { %3714 = vmatpush1.bf16.msra.mxu0 %v5109_v40  ;;  %v5169_v40 = vld [vmem:[#allocation10 + $0x1c0] ss:$8 sps:$4 sm:$0xff]  }
 0x37b   : > { %3715 = vmatprep.subr.bf16.mxu0 %v5114_v41  ;;  %v5174_v41 = vld [vmem:[#allocation10 + $0x1d4] ss:$8 sps:$4 sm:$0xff]  }
 0x37e   : > { %3716 = vmatpush1.bf16.msra.mxu0 %v5112_v42  ;;  %v5172_v42 = vld [vmem:[#allocation10 + $0x1d0] ss:$8 sps:$4 sm:$0xff]  }
 0x37f   : > { %3717 = vmatprep.subr.bf16.mxu0 %v5117_v43  ;;  %v2480_v43 = vrot.slane %v5764_v9, %v5736_v38  ;;  %v3365_v38 = vld [vmem:[%s5839_s8] sm:$0x3] }
 0x382   : > { %3718 = vmatpush1.bf16.msra.mxu0 %v5115_v44  ;;  %v5177_v44 = vld [vmem:[#allocation10 + $0x1e4] ss:$8 sps:$4 sm:$0xff]  }
 0x383   : > { %3719 = vmatprep.subr.bf16.mxu0 %v5120_v45  ;;  %v5175_v45 = vld [vmem:[#allocation10 + $0x1e0] ss:$8 sps:$4 sm:$0xff]  }
 0x386   : > { %3720 = vmatpush1.bf16.msra.mxu0 %v5118_v46 }
 0x387   : > { %3721 = vmatprep.subr.bf16.mxu0 %v5123_v47  ;;  %v5180_v47 = vld [vmem:[#allocation10 + $0x1f4] ss:$8 sps:$4 sm:$0xff]  }
 0x38a   : > { %3722 = vmatpush1.bf16.msra.mxu0 %v5121_v48  ;;  %v5178_v48 = vld [vmem:[#allocation10 + $0x1f0] ss:$8 sps:$4 sm:$0xff]  }
 0x38b   : > { %3723 = vmatprep.subr.bf16.mxu0 %v5126_v49 }
 0x38e   : > { %3724 = vmatpush1.bf16.msra.mxu0 %v5124_v50 }
 0x38f   : > { %3725 = vmatprep.subr.bf16.mxu0 %v5129_v51  ;;  %v3370_v51 = vrot.slane %v3365_v38, %v5721_v15 }
 0x392   : > { %3726 = vmatpush1.bf16.msra.mxu0 %v5127_v53  ;;  %v3374_v53 = vrot.slane %v3365_v38, %v5729_v16 }
 0x393   : > { %3727 = vmatprep.subr.bf16.mxu0 %v5132_v54 }
 0x396   : > { %3728 = vmatpush1.bf16.msra.mxu0 %v5130_v14 }
 0x397   : > { %3738 = vmatprep.subr.bf16.mxu0 %v5135_v55 }
 0x42c   : > { %v3204_v60 = vpop.f32.mrb[8].mxu0  ;;  %v5772_v61 = vpop.f32.mrb[12].mxu1 }
 0x42d   : > { %v4388_v62 = vadd.f32 %v3204_v60, %v2472_v56  ;;  %v3206_v63 = vpop.f32.mrb[9].mxu0  ;;  %v3288_v0 = vpop.f32.mrb[13].mxu1  ;;  %v4390_v46 = vadd.f32 %v5772_v61, %v2480_v43 }
 0x42e   : > { %v4389_v1 = vadd.f32 %v3206_v63, %v2476_v57  ;;  %v4391_v2 = vadd.f32 %v3288_v0, %v2484_v58  ;;  %v3208_v3 = vpop.f32.mrb[10].mxu0  ;;  %v3290_v4 = vpop.f32.mrb[14].mxu1 }
 0x42f   : > { %v3293_v5 = vmax.f32 %v4388_v62, 0.0  ;;  %v3209_v6 = vpop.f32.mrb[11].mxu0  ;;  %v3291_v8 = vpop.f32.mrb[15].mxu1  ;;  %v3295_v49 = vmax.f32 %v4390_v46, 0.0 }
 0x430   : > { %v3294_v10 = vmax.f32 %v4389_v1, 0.0  ;;  %v3296_v11 = vmax.f32 %v4391_v2, 0.0 }
 0x431   : > { %v3297_v52 = vpack.c.bf16 %v3293_v5, %v3293_v5  ;;  %v3299_v50 = vpack.c.bf16 %v3295_v49, %v3295_v49 }
 0x432   : > { %v3298_v12 = vpack.c.bf16 %v3294_v10, %v3294_v10  ;;  %v3300_v39 = vpack.c.bf16 %v3296_v11, %v3296_v11 }
 0x434   : > { %3729 = vmatprep.mubr.bf16.mxu0 %v3298_v12 }
 0x435   : > { %3730 = vmatmul.mubr.bf16.vlgmr.msra.gmra.mrb[12].mxu0 %v3297_v52 }
 0x436   : > { %3739 = vmatpush1.bf16.msra.mxu0 %v5133_v13  ;;  %3770 = vmatprep.mubr.bf16.mxu0 %v3300_v39 }
 0x437   : > { %3740 = vmatprep.subr.bf16.mxu0 %v5138_v17 }
 0x43a   : > { %3741 = vmatpush1.bf16.msra.mxu0 %v5136_v18 }
 0x43b   : > { %3742 = vmatprep.subr.bf16.mxu0 %v5141_v19 }
 0x43e   : > { %3743 = vmatpush1.bf16.msra.mxu0 %v5139_v20 }
 0x43f   : > { %3744 = vmatprep.subr.bf16.mxu0 %v5144_v21 }
 0x442   : > { %3745 = vmatpush1.bf16.msra.mxu0 %v5142_v7 }
 0x443   : > { %3746 = vmatprep.subr.bf16.mxu0 %v5147_v22 }
 0x446   : > { %3747 = vmatpush1.bf16.msra.mxu0 %v5145_v23 }
 0x447   : > { %3748 = vmatprep.subr.bf16.mxu0 %v5150_v24 }
 0x44a   : > { %3749 = vmatpush1.bf16.msra.mxu0 %v5148_v59 }
 0x44b   : > { %3750 = vmatprep.subr.bf16.mxu0 %v5153_v25 }
 0x44e   : > { %3751 = vmatpush1.bf16.msra.mxu0 %v5151_v26 }
 0x44f   : > { %3752 = vmatprep.subr.bf16.mxu0 %v5156_v27 }
 0x452   : > { %3753 = vmatpush1.bf16.msra.mxu0 %v5154_v28 }
 0x453   : > { %3754 = vmatprep.subr.bf16.mxu0 %v5159_v29 }
 0x456   : > { %3755 = vmatpush1.bf16.msra.mxu0 %v5157_v30 }
 0x457   : > { %3756 = vmatprep.subr.bf16.mxu0 %v5162_v31 }
 0x45a   : > { %3757 = vmatpush1.bf16.msra.mxu0 %v5160_v32 }
 0x45b   : > { %3758 = vmatprep.subr.bf16.mxu0 %v5165_v33 }
 0x45e   : > { %3759 = vmatpush1.bf16.msra.mxu0 %v5163_v34 }
 0x45f   : > { %3760 = vmatprep.subr.bf16.mxu0 %v5168_v35 }
 0x462   : > { %3761 = vmatpush1.bf16.msra.mxu0 %v5166_v36 }
 0x463   : > { %3762 = vmatprep.subr.bf16.mxu0 %v5171_v37 }
 0x466   : > { %3763 = vmatpush1.bf16.msra.mxu0 %v5169_v40 }
 0x467   : > { %3764 = vmatprep.subr.bf16.mxu0 %v5174_v41 }
 0x46a   : > { %3765 = vmatpush1.bf16.msra.mxu0 %v5172_v42 }
 0x46b   : > { %3766 = vmatprep.subr.bf16.mxu0 %v5177_v44 }
 0x46e   : > { %3767 = vmatpush1.bf16.msra.mxu0 %v5175_v45 }
 0x46f   : > { %3768 = vmatprep.subr.bf16.mxu0 %v5180_v47 }
 0x472   : > { %3769 = vmatpush1.bf16.msra.mxu0 %v5178_v48 }
 0x475   : > { %3771 = vmatmul.mubr.bf16.vlgmr.msra.gmra.mrb[12].mxu0 %v3299_v50 }
 0x548   : > { %v3772_v54 = vpop.f32.mrb[12].mxu0 }
 0x549   : > { %v4392_v14 = vadd.f32 %v3772_v54, %v3370_v51  ;;  %v3774_v55 = vpop.f32.mrb[13].mxu0 }
 0x54a   : > { %v4393_v9 = vadd.f32 %v3774_v55, %v3374_v53  ;;  %v3776_v56 = vpop.f32.mrb[14].mxu0 }
 0x54b   : > { %v3779_v57 = vmax.f32 %v4392_v14, 0.0  ;;  %v3777_v58 = vpop.f32.mrb[15].mxu0 }
 0x54c   : > { %v3780_v60 = vmax.f32 %v4393_v9, 0.0 }
 0x54d   : > { %3781 = vst [vmem:[%s406_s17] sm:$0xff] %v3779_v57 }
 0x54e   : > { %3782 = vst [vmem:[%s406_s17 + $0x8] sm:$0xff] %v3780_v60 }
 0x54f   : > { %5336 = shalt.err (!%p5333_p0)
}
 0x550   : > { %s5337_s1 = scalar_lea.hbm %s5787_s20, 256  ;;  %s5341_s21 = scalar_lea.hbm %s5862_s23, 512 }
 0x551   : > { %p5338_p2 = scmp.ne.s32.totalorder %s5787_s20, %s5337_s1  ;;  %p5342_p10 = scmp.lt.u32.totalorder %s5787_s20, %s5862_s23 }
 0x552   : > { %p5343_p11 = scmp.lt.u32.totalorder %s5341_s21, %s5337_s1  ;;  %p5345_p6 = scmp.lt.u32.totalorder %s5337_s1, %s5787_s20 }
 0x553   : > { %p5339_p8 = pnand %p5338_p2, %p5863_p5 }
 0x554   : > { %p5344_p1 = por %p5343_p11, %p5342_p10 }
 0x555   : > { %p5340_p4 = pneg %p5339_p8 }
 0x556   : > { %p5346_p7 = por %p5345_p6, %p5344_p1 }
 0x558   : > { %p5347_p9 = pnand %p5346_p7, %p5340_p4 }
 0x55a   : > { %5350 = shalt.err (!%p5347_p9)
}
 0x55b   : > { %4436 = dma.vmem_to_hbm [thread:$0]  (%p5863_p5), %s5789_s19, 256, %s5787_s20, %s3784_s15  }
 0x55c PF: > { %s3810_s16 = sand.u32 1, %s5385_s30   ;;  %p5864_p12 = scmp.ne.s32.totalorder %s5855_s13, 0 }
 0x55d   : > { %p5865_p3 = scmp.ge.s32.totalorder %s5397_s12, 2  ;;  %s3811_s9 = scalar_lea.sflag [#allocation4], %s3810_s16 }
 0x55f   : > { %p4456_p13 = pnand %p5865_p3, %p5864_p12 }
 0x561   : > { %5380 = dma.done.wait (!%p4456_p13), %s3811_s9, 256  }
 0x562   : > { %5382 = vsyncadd (!%p4456_p13), %s3811_s9, 4294967040  ;;  %p24_p0 = scmp.ge.s32.totalorder %s5608_s22, 4   ;;  %s5866_s30 = smov %s5389_s10 }
 0x563   : > { %s5867_s10 = smov %s5393_s11  ;;  %s5868_s11 = smov %s5619_s26 }
 0x564   : > { %s5869_s12 = smov %s5608_s22  ;;  %26 = sbr.rel (!%p24_p0) target bundleno = 10 (0xa), region = 117 }
 0x56b   :  { %3816 = vsyncpa [#allocation3], 1 }
 0x56c   :  { %3818 = vsyncpa [#allocation3 + $0x1], 1 }
 0x56d   :  { %3819 = vsyncpa [#allocation6], 1 }
 0x56e   :  { %3820 = vsyncpa [#allocation9], 1 }
 0x56f   :  { %3821 = vsyncpa [#allocation4], 1 }
 0x570   :  { %3823 = vsyncpa [#allocation4 + $0x1], 1 }

</bundles_post_ra>
